<compile_context>
chip_gen: v7x
topology: tpu7x:2x2x1
jax: 0.10.0
libtpu: 0.0.40
codegen_flags: <defaults>
</compile_context>

<pallas_src>
import jax
import jax.numpy as jnp
import numpy as np
from jax.experimental import pallas as pl
from jax.experimental.pallas import tpu as pltpu

EMB_DIM = 32
HIDDEN = 32
VOCAB = 50
TAGSET = 5
BATCH = 2
SEQ = 8


def nre_kernel(ids2_ref, len_ref, w_fold_ref, w_hh_ref, w_head_ref, b_head_ref,
               out_ref):
    H2 = w_hh_ref.shape[0]            # 2H (fwd | bwd)
    H = H2 // 2
    B2 = len_ref.shape[0]             # padded combined batch (sublane multiple)
    N = ids2_ref.shape[0]             # T * B2
    T = N // B2
    VPAD = w_fold_ref.shape[0]        # 128 (lane-padded 2*VOCAB + bias row)
    B = out_ref.shape[0]
    TAG = out_ref.shape[1]

    # ---- fused embedding gather + input projection + bias (one bf16 dot) ----
    # "three-hot" rows: lane ids_f hits rows [0,V) (fwd-folded weights),
    # lane V+ids_b hits rows [V,2V) (bwd-folded weights), lane VPAD-1 adds bias.
    iota = jax.lax.broadcasted_iota(jnp.int32, (N, VPAD), 1)
    hit = jnp.logical_or(iota == ids2_ref[:, 0:1], iota == ids2_ref[:, 1:2])
    hit = jnp.logical_or(hit, iota == (VPAD - 1))
    oh = hit.astype(jnp.bfloat16)                                   # (N, 128)
    xg = jnp.dot(oh, w_fold_ref[...],
                 preferred_element_type=jnp.float32)                # (N, 8H) f32

    w_hh = w_hh_ref[...]                                            # (2H, 8H) bf16
    lens = len_ref[...]                                             # (B2, 1) int32

    # per-step validity table: tmat[t, j] = t for fwd lanes, T-1-t for bwd lanes
    col = jax.lax.broadcasted_iota(jnp.int32, (T, H2), 1)
    row = jax.lax.broadcasted_iota(jnp.int32, (T, H2), 0)
    tmat = jnp.where(col < H, row, T - 1 - row)

    h = jnp.zeros((B2, H2), jnp.float32)                            # [h_fwd | h_bwd]
    c = jnp.zeros((B2, H2), jnp.float32)

    for t in range(T):  # fully unrolled; all slices static & sublane-aligned
        # single fused recurrent MXU push (fwd + bwd via block-diagonal Whh)
        gates = xg[t * B2:(t + 1) * B2, :] + jnp.dot(
            h.astype(jnp.bfloat16), w_hh, preferred_element_type=jnp.float32)

        sg = jax.nn.sigmoid(gates)              # one EUP dispatch covers i,f,o,g
        i_g = sg[:, 0:H2]
        f_g = sg[:, H2:2 * H2]
        o_g = sg[:, 2 * H2:3 * H2]
        g_g = 2.0 * sg[:, 3 * H2:4 * H2] - 1.0  # tanh via sigmoid (g cols pre-scaled x2)

        c_new = f_g * c + i_g * g_g
        h_new = o_g * jnp.tanh(c_new)

        m = tmat[t:t + 1, :] < lens             # (B2, H2) bool, off the recurrent chain
        h = jnp.where(m, h_new, h)
        c = jnp.where(m, c_new, c)

    # ---- collapsed head: feat2tag(fc(h)) folded into one dot ----------------
    out_all = jnp.dot(h.astype(jnp.bfloat16), w_head_ref[...],
                      preferred_element_type=jnp.float32)           # (B2, 2*TAG)
    out_ref[...] = (out_all[0:B, 0:TAG] + out_all[B:2 * B, TAG:2 * TAG]
                    + b_head_ref[...])


def init_params(key):
    ks = jax.random.split(key, 11)
    s = 0.1
    p = {}
    p["embedding"] = jax.random.normal(ks[0], (VOCAB, EMB_DIM), jnp.float32) * s
    # LSTM weights stored (in_features, 4H), PyTorch gate order [i,f,g,o];
    # bias = b_ih + b_hh folded per direction.
    p["wih_f"] = jax.random.normal(ks[1], (EMB_DIM, 4 * HIDDEN), jnp.float32) * s
    p["whh_f"] = jax.random.normal(ks[2], (HIDDEN, 4 * HIDDEN), jnp.float32) * s
    p["b_f"]   = jax.random.normal(ks[3], (1, 4 * HIDDEN), jnp.float32) * s
    p["wih_b"] = jax.random.normal(ks[4], (EMB_DIM, 4 * HIDDEN), jnp.float32) * s
    p["whh_b"] = jax.random.normal(ks[5], (HIDDEN, 4 * HIDDEN), jnp.float32) * s
    p["b_b"]   = jax.random.normal(ks[6], (1, 4 * HIDDEN), jnp.float32) * s
    p["fc_w"]  = jax.random.normal(ks[7], (2 * HIDDEN, HIDDEN), jnp.float32) * s
    p["fc_b"]  = jax.random.normal(ks[8], (1, HIDDEN), jnp.float32) * s
    p["tag_w"] = jax.random.normal(ks[9], (2 * HIDDEN, TAGSET), jnp.float32) * s
    p["tag_b"] = jax.random.normal(ks[10], (1, TAGSET), jnp.float32) * s
    return p


def nre_forward(params, ps, p_lengths, cs, c_lengths):
    B, T = ps.shape
    H, E, V = HIDDEN, EMB_DIM, VOCAB
    B2 = ((2 * B + 7) // 8) * 8          # pad combined batch to sublane multiple
    npad = B2 - 2 * B

    # ---- combined premise+claim batch (padded rows have length 0) ----------
    ids = jnp.concatenate([ps, cs], axis=0).astype(jnp.int32)            # (2B, T)
    ids = jnp.concatenate([ids, jnp.zeros((npad, T), jnp.int32)], axis=0)
    lens = jnp.concatenate([p_lengths.astype(jnp.int32),
                            c_lengths.astype(jnp.int32),
                            jnp.zeros((npad,), jnp.int32)], axis=0).reshape(B2, 1)

    # time-major id streams; backward stream pre-reversed in time; +V offsets
    # the backward ids into the bwd block of the folded input weight.
    ids_f = jnp.transpose(ids, (1, 0)).reshape(T * B2)
    ids_b = jnp.transpose(ids[:, ::-1], (1, 0)).reshape(T * B2)
    ids2 = jnp.stack([ids_f, ids_b + V], axis=1)                         # (T*B2, 2)

    # ---- fold per-direction LSTM weights into the fused gate layout --------
    # gate blocks [i | f | o | g] of width 2H, each block = [fwd H | bwd H]
    def gate_blocks(w):  # PyTorch gate order i,f,g,o -> [i, f, o, g]
        return [w[:, k * H:(k + 1) * H] for k in (0, 1, 3, 2)]

    def fold_dir(w, zero, is_fwd):
        blocks = gate_blocks(w)
        cols = []
        for g in range(4):
            pair = [blocks[g], zero] if is_fwd else [zero, blocks[g]]
            cols.append(jnp.concatenate(pair, axis=1))
        return jnp.concatenate(cols, axis=1)

    z_e = jnp.zeros((E, H), jnp.float32)
    w_in_f = fold_dir(params["wih_f"], z_e, True)        # (E, 8H), bwd cols zero
    w_in_b = fold_dir(params["wih_b"], z_e, False)       # (E, 8H), fwd cols zero
    z_h = jnp.zeros((H, H), jnp.float32)
    w_hh = jnp.concatenate([fold_dir(params["whh_f"], z_h, True),
                            fold_dir(params["whh_b"], z_h, False)], axis=0)

    bf, bb = gate_blocks(params["b_f"]), gate_blocks(params["b_b"])
    b_all = jnp.concatenate(
        [jnp.concatenate([bf[g], bb[g]], axis=1) for g in range(4)], axis=1)  # (1, 8H)

    # pre-scale the g-gate columns by 2 so tanh(x) = 2*sigmoid(2x) - 1 in-kernel
    gscale = jnp.concatenate([jnp.ones((1, 6 * H), jnp.float32),
                              jnp.full((1, 2 * H), 2.0, jnp.float32)], axis=1)
    w_in_f = w_in_f * gscale
    w_in_b = w_in_b * gscale
    w_hh = (w_hh * gscale).astype(jnp.bfloat16)                      # (2H, 8H) bf16
    b_all = b_all * gscale

    # fold embedding lookup + input projection + bias into one (128, 8H) weight:
    #   rows [0,V)   -> emb @ Wih_fwd   (hit by lane ids_f)
    #   rows [V,2V)  -> emb @ Wih_bwd   (hit by lane V + ids_b)
    #   row  127     -> folded bias     (hit by the always-on bias lane)
    emb = params["embedding"]
    vpad = 128
    w_fold = jnp.concatenate(
        [emb @ w_in_f, emb @ w_in_b,
         jnp.zeros((vpad - 2 * V - 1, 8 * H), jnp.float32), b_all],
        axis=0).astype(jnp.bfloat16)                                 # (128, 8H)

    # collapsed head: scores = h_p @ (fc_w@tag_w[:H]) + h_c @ (fc_w@tag_w[H:]) + b
    # Valid only because dropout is identity and fc -> feat2tag has no activation.
    # TODO(synk): nn.Dropout(0.5) is implemented as eval-mode identity
    # (training-mode RNG dropout is not reproduced).
    fc_w, fc_b = params["fc_w"], params["fc_b"]
    tag_w, tag_b = params["tag_w"], params["tag_b"]
    w_head = jnp.concatenate([fc_w @ tag_w[:H], fc_w @ tag_w[H:]],
                             axis=1).astype(jnp.bfloat16)            # (2H, 2*TAGSET)
    b_head = fc_b @ (tag_w[:H] + tag_w[H:]) + tag_b                  # (1, TAGSET)

    args = (ids2, lens, w_fold, w_hh, w_head, b_head)
    vmem = pl.BlockSpec(memory_space=pltpu.MemorySpace.VMEM)
    return pl.pallas_call(
        nre_kernel,
        out_shape=jax.ShapeDtypeStruct((B, TAGSET), jnp.float32),
        in_specs=[vmem] * len(args),
        out_specs=vmem,
    )(*args)


def ref_forward(params, ps, p_lengths, cs, c_lengths):
    """Pure numpy reference of the masked bidirectional LSTM + heads."""
    emb = np.asarray(params["embedding"])

    def sigmoid(x):
        return 1.0 / (1.0 + np.exp(-x))

    def bilstm(ids, lens):
        x = emb[np.asarray(ids)]                       # (B, T, E)
        B, T, _ = x.shape
        H = HIDDEN
        lens = np.asarray(lens)

        def run(wih, whh, b, order):
            wih = np.asarray(wih); whh = np.asarray(whh); b = np.asarray(b)
            h = np.zeros((B, H), np.float32); c = np.zeros((B, H), np.float32)
            for t in order:
                g = x[:, t] @ wih + h @ whh + b
                i = sigmoid(g[:, :H]); f = sigmoid(g[:, H:2 * H])
                gg = np.tanh(g[:, 2 * H:3 * H]); o = sigmoid(g[:, 3 * H:])
                cn = f * c + i * gg
                hn = o * np.tanh(cn)
                m = (t < lens)[:, None]
                h = np.where(m, hn, h); c = np.where(m, cn, c)
            return h

        hf = run(params["wih_f"], params["whh_f"], params["b_f"], range(T))
        hb = run(params["wih_b"], params["whh_b"], params["b_b"],
                 reversed(range(T)))
        return np.concatenate([hf, hb], axis=1)

    p_hn = bilstm(ps, p_lengths)
    c_hn = bilstm(cs, c_lengths)
    p_fc = p_hn @ np.asarray(params["fc_w"]) + np.asarray(params["fc_b"])
    c_fc = c_hn @ np.asarray(params["fc_w"]) + np.asarray(params["fc_b"])
    feats = np.concatenate([p_fc, c_fc], axis=1)
    return feats @ np.asarray(params["tag_w"]) + np.asarray(params["tag_b"])


if __name__ == "__main__":
    key = jax.random.PRNGKey(0)
    pkey, k1, k2 = jax.random.split(key, 3)
    params = init_params(pkey)

    ps = jax.random.randint(k1, (BATCH, SEQ), 0, VOCAB, dtype=jnp.int32)
    cs = jax.random.randint(k2, (BATCH, SEQ), 0, VOCAB, dtype=jnp.int32)
    p_lengths = jnp.array([5, 8], dtype=jnp.int32)   # variable lengths (<= SEQ)
    c_lengths = jnp.array([8, 3], dtype=jnp.int32)

    scores = nre_forward(params, ps, p_lengths, cs, c_lengths)
    scores = jax.block_until_ready(scores)

    ref = ref_forward(params, ps, p_lengths, cs, c_lengths)
    assert scores.shape == (BATCH, TAGSET)
    np.testing.assert_allclose(np.asarray(scores), ref, rtol=2e-2, atol=2e-2)
    print("KERNEL_OK")
</pallas_src>

<mosaic_0001>
module attributes {stable_mosaic.version = 11 : i64} {
  func.func @nre_kernel(%arg0: memref<64x2xi32, #tpu.memory_space<vmem>>, %arg1: memref<8x1xi32, #tpu.memory_space<vmem>>, %arg2: memref<128x256xbf16, #tpu.memory_space<vmem>>, %arg3: memref<64x256xbf16, #tpu.memory_space<vmem>>, %arg4: memref<64x10xbf16, #tpu.memory_space<vmem>>, %arg5: memref<1x5xf32, #tpu.memory_space<vmem>>, %arg6: memref<2x5xf32, #tpu.memory_space<vmem>>) attributes {dimension_semantics = [], scalar_prefetch = 0 : i64, scratch_operands = 0 : i64, tpu.core_type = #tpu.core_type<tc>} {
    %0 = tpu.iota {dimensions = array<i32: 1>} : vector<64x128xi32>
    %c0 = arith.constant 0 : index
    %c0_0 = arith.constant 0 : index
    %1 = vector.load %arg0[%c0, %c0_0] : memref<64x2xi32, #tpu.memory_space<vmem>>, vector<64x1xi32>
    %2 = vector.broadcast %1 : vector<64x1xi32> to vector<64x128xi32>
    %3 = arith.cmpi eq, %0, %2 : vector<64x128xi32>
    %c0_1 = arith.constant 0 : index
    %c1 = arith.constant 1 : index
    %4 = vector.load %arg0[%c0_1, %c1] : memref<64x2xi32, #tpu.memory_space<vmem>>, vector<64x1xi32>
    %5 = vector.broadcast %4 : vector<64x1xi32> to vector<64x128xi32>
    %6 = arith.cmpi eq, %0, %5 : vector<64x128xi32>
    %7 = arith.ori %3, %6 : vector<64x128xi1>
    %c127_i32 = arith.constant 127 : i32
    %8 = vector.broadcast %c127_i32 : i32 to vector<64x128xi32>
    %9 = arith.cmpi eq, %0, %8 : vector<64x128xi32>
    %10 = arith.ori %7, %9 : vector<64x128xi1>
    %11 = arith.extui %10 : vector<64x128xi1> to vector<64x128xi32>
    %12 = arith.sitofp %11 : vector<64x128xi32> to vector<64x128xf32>
    %13 = arith.truncf %12 : vector<64x128xf32> to vector<64x128xbf16>
    %c0_2 = arith.constant 0 : index
    %c0_3 = arith.constant 0 : index
    %14 = vector.load %arg2[%c0_2, %c0_3] : memref<128x256xbf16, #tpu.memory_space<vmem>>, vector<128x256xbf16>
    %cst = arith.constant dense<0.000000e+00> : vector<64x256xf32>
    %15 = tpu.matmul %13, %14, %cst {dimension_numbers = #tpu.dot_dimension_numbers<[1], [0], [0], [1], [0, 0, 1, 1], [], []>} : vector<64x128xbf16>, vector<128x256xbf16>, vector<64x256xf32> -> vector<64x256xf32>
    %c0_4 = arith.constant 0 : index
    %c0_5 = arith.constant 0 : index
    %16 = vector.load %arg3[%c0_4, %c0_5] : memref<64x256xbf16, #tpu.memory_space<vmem>>, vector<64x256xbf16>
    %c0_6 = arith.constant 0 : index
    %c0_7 = arith.constant 0 : index
    %17 = vector.load %arg1[%c0_6, %c0_7] : memref<8x1xi32, #tpu.memory_space<vmem>>, vector<8x1xi32>
    %18 = tpu.iota {dimensions = array<i32: 1>} : vector<8x64xi32>
    %19 = tpu.iota {dimensions = array<i32: 0>} : vector<8x64xi32>
    %c32_i32 = arith.constant 32 : i32
    %20 = vector.broadcast %c32_i32 : i32 to vector<8x64xi32>
    %21 = arith.cmpi slt, %18, %20 : vector<8x64xi32>
    %c7_i32 = arith.constant 7 : i32
    %22 = vector.broadcast %c7_i32 : i32 to vector<8x64xi32>
    %23 = arith.subi %22, %19 : vector<8x64xi32>
    %24 = arith.select %21, %19, %23 : vector<8x64xi1>, vector<8x64xi32>
    %cst_8 = arith.constant 0.000000e+00 : f32
    %25 = vector.broadcast %cst_8 : f32 to vector<8x64xf32>
    %cst_9 = arith.constant 0.000000e+00 : f32
    %26 = vector.broadcast %cst_9 : f32 to vector<8x64xf32>
    %27 = vector.extract_strided_slice %15 {offsets = [0, 0], sizes = [8, 256], strides = [1, 1]} : vector<64x256xf32> to vector<8x256xf32>
    %28 = arith.truncf %25 : vector<8x64xf32> to vector<8x64xbf16>
    %cst_10 = arith.constant dense<0.000000e+00> : vector<8x256xf32>
    %29 = tpu.matmul %28, %16, %cst_10 {dimension_numbers = #tpu.dot_dimension_numbers<[1], [0], [0], [1], [0, 0, 1, 1], [], []>} : vector<8x64xbf16>, vector<64x256xbf16>, vector<8x256xf32> -> vector<8x256xf32>
    %30 = arith.addf %27, %29 : vector<8x256xf32>
    %31 = arith.negf %30 : vector<8x256xf32>
    %32 = math.exp %31 : vector<8x256xf32>
    %cst_11 = arith.constant 1.000000e+00 : f32
    %33 = vector.broadcast %cst_11 : f32 to vector<8x256xf32>
    %34 = arith.addf %33, %32 : vector<8x256xf32>
    %35 = arith.divf %33, %34 : vector<8x256xf32>
    %36 = vector.extract_strided_slice %35 {offsets = [0, 0], sizes = [8, 64], strides = [1, 1]} : vector<8x256xf32> to vector<8x64xf32>
    %37 = vector.extract_strided_slice %35 {offsets = [0, 64], sizes = [8, 64], strides = [1, 1]} : vector<8x256xf32> to vector<8x64xf32>
    %38 = vector.extract_strided_slice %35 {offsets = [0, 128], sizes = [8, 64], strides = [1, 1]} : vector<8x256xf32> to vector<8x64xf32>
    %39 = vector.extract_strided_slice %35 {offsets = [0, 192], sizes = [8, 64], strides = [1, 1]} : vector<8x256xf32> to vector<8x64xf32>
    %cst_12 = arith.constant 2.000000e+00 : f32
    %40 = vector.broadcast %cst_12 : f32 to vector<8x64xf32>
    %41 = arith.mulf %40, %39 : vector<8x64xf32>
    %cst_13 = arith.constant 1.000000e+00 : f32
    %42 = vector.broadcast %cst_13 : f32 to vector<8x64xf32>
    %43 = arith.subf %41, %42 : vector<8x64xf32>
    %44 = arith.mulf %37, %26 : vector<8x64xf32>
    %45 = arith.mulf %36, %43 : vector<8x64xf32>
    %46 = arith.addf %44, %45 : vector<8x64xf32>
    %47 = math.tanh %46 : vector<8x64xf32>
    %48 = arith.mulf %38, %47 : vector<8x64xf32>
    %49 = vector.extract_strided_slice %24 {offsets = [0, 0], sizes = [1, 64], strides = [1, 1]} : vector<8x64xi32> to vector<1x64xi32>
    %50 = vector.broadcast %49 : vector<1x64xi32> to vector<8x64xi32>
    %51 = vector.broadcast %17 : vector<8x1xi32> to vector<8x64xi32>
    %52 = arith.cmpi slt, %50, %51 : vector<8x64xi32>
    %53 = arith.select %52, %48, %25 : vector<8x64xi1>, vector<8x64xf32>
    %54 = arith.select %52, %46, %26 : vector<8x64xi1>, vector<8x64xf32>
    %55 = vector.extract_strided_slice %15 {offsets = [8, 0], sizes = [8, 256], strides = [1, 1]} : vector<64x256xf32> to vector<8x256xf32>
    %56 = arith.truncf %53 : vector<8x64xf32> to vector<8x64xbf16>
    %cst_14 = arith.constant dense<0.000000e+00> : vector<8x256xf32>
    %57 = tpu.matmul %56, %16, %cst_14 {dimension_numbers = #tpu.dot_dimension_numbers<[1], [0], [0], [1], [0, 0, 1, 1], [], []>} : vector<8x64xbf16>, vector<64x256xbf16>, vector<8x256xf32> -> vector<8x256xf32>
    %58 = arith.addf %55, %57 : vector<8x256xf32>
    %59 = arith.negf %58 : vector<8x256xf32>
    %60 = math.exp %59 : vector<8x256xf32>
    %cst_15 = arith.constant 1.000000e+00 : f32
    %61 = vector.broadcast %cst_15 : f32 to vector<8x256xf32>
    %62 = arith.addf %61, %60 : vector<8x256xf32>
    %63 = arith.divf %61, %62 : vector<8x256xf32>
    %64 = vector.extract_strided_slice %63 {offsets = [0, 0], sizes = [8, 64], strides = [1, 1]} : vector<8x256xf32> to vector<8x64xf32>
    %65 = vector.extract_strided_slice %63 {offsets = [0, 64], sizes = [8, 64], strides = [1, 1]} : vector<8x256xf32> to vector<8x64xf32>
    %66 = vector.extract_strided_slice %63 {offsets = [0, 128], sizes = [8, 64], strides = [1, 1]} : vector<8x256xf32> to vector<8x64xf32>
    %67 = vector.extract_strided_slice %63 {offsets = [0, 192], sizes = [8, 64], strides = [1, 1]} : vector<8x256xf32> to vector<8x64xf32>
    %cst_16 = arith.constant 2.000000e+00 : f32
    %68 = vector.broadcast %cst_16 : f32 to vector<8x64xf32>
    %69 = arith.mulf %68, %67 : vector<8x64xf32>
    %cst_17 = arith.constant 1.000000e+00 : f32
    %70 = vector.broadcast %cst_17 : f32 to vector<8x64xf32>
    %71 = arith.subf %69, %70 : vector<8x64xf32>
    %72 = arith.mulf %65, %54 : vector<8x64xf32>
    %73 = arith.mulf %64, %71 : vector<8x64xf32>
    %74 = arith.addf %72, %73 : vector<8x64xf32>
    %75 = math.tanh %74 : vector<8x64xf32>
    %76 = arith.mulf %66, %75 : vector<8x64xf32>
    %77 = vector.extract_strided_slice %24 {offsets = [1, 0], sizes = [1, 64], strides = [1, 1]} : vector<8x64xi32> to vector<1x64xi32>
    %78 = vector.broadcast %77 : vector<1x64xi32> to vector<8x64xi32>
    %79 = vector.broadcast %17 : vector<8x1xi32> to vector<8x64xi32>
    %80 = arith.cmpi slt, %78, %79 : vector<8x64xi32>
    %81 = arith.select %80, %76, %53 : vector<8x64xi1>, vector<8x64xf32>
    %82 = arith.select %80, %74, %54 : vector<8x64xi1>, vector<8x64xf32>
    %83 = vector.extract_strided_slice %15 {offsets = [16, 0], sizes = [8, 256], strides = [1, 1]} : vector<64x256xf32> to vector<8x256xf32>
    %84 = arith.truncf %81 : vector<8x64xf32> to vector<8x64xbf16>
    %cst_18 = arith.constant dense<0.000000e+00> : vector<8x256xf32>
    %85 = tpu.matmul %84, %16, %cst_18 {dimension_numbers = #tpu.dot_dimension_numbers<[1], [0], [0], [1], [0, 0, 1, 1], [], []>} : vector<8x64xbf16>, vector<64x256xbf16>, vector<8x256xf32> -> vector<8x256xf32>
    %86 = arith.addf %83, %85 : vector<8x256xf32>
    %87 = arith.negf %86 : vector<8x256xf32>
    %88 = math.exp %87 : vector<8x256xf32>
    %cst_19 = arith.constant 1.000000e+00 : f32
    %89 = vector.broadcast %cst_19 : f32 to vector<8x256xf32>
    %90 = arith.addf %89, %88 : vector<8x256xf32>
    %91 = arith.divf %89, %90 : vector<8x256xf32>
    %92 = vector.extract_strided_slice %91 {offsets = [0, 0], sizes = [8, 64], strides = [1, 1]} : vector<8x256xf32> to vector<8x64xf32>
    %93 = vector.extract_strided_slice %91 {offsets = [0, 64], sizes = [8, 64], strides = [1, 1]} : vector<8x256xf32> to vector<8x64xf32>
    %94 = vector.extract_strided_slice %91 {offsets = [0, 128], sizes = [8, 64], strides = [1, 1]} : vector<8x256xf32> to vector<8x64xf32>
    %95 = vector.extract_strided_slice %91 {offsets = [0, 192], sizes = [8, 64], strides = [1, 1]} : vector<8x256xf32> to vector<8x64xf32>
    %cst_20 = arith.constant 2.000000e+00 : f32
    %96 = vector.broadcast %cst_20 : f32 to vector<8x64xf32>
    %97 = arith.mulf %96, %95 : vector<8x64xf32>
    %cst_21 = arith.constant 1.000000e+00 : f32
    %98 = vector.broadcast %cst_21 : f32 to vector<8x64xf32>
    %99 = arith.subf %97, %98 : vector<8x64xf32>
    %100 = arith.mulf %93, %82 : vector<8x64xf32>
    %101 = arith.mulf %92, %99 : vector<8x64xf32>
    %102 = arith.addf %100, %101 : vector<8x64xf32>
    %103 = math.tanh %102 : vector<8x64xf32>
    %104 = arith.mulf %94, %103 : vector<8x64xf32>
    %105 = vector.extract_strided_slice %24 {offsets = [2, 0], sizes = [1, 64], strides = [1, 1]} : vector<8x64xi32> to vector<1x64xi32>
    %106 = vector.broadcast %105 : vector<1x64xi32> to vector<8x64xi32>
    %107 = vector.broadcast %17 : vector<8x1xi32> to vector<8x64xi32>
    %108 = arith.cmpi slt, %106, %107 : vector<8x64xi32>
    %109 = arith.select %108, %104, %81 : vector<8x64xi1>, vector<8x64xf32>
    %110 = arith.select %108, %102, %82 : vector<8x64xi1>, vector<8x64xf32>
    %111 = vector.extract_strided_slice %15 {offsets = [24, 0], sizes = [8, 256], strides = [1, 1]} : vector<64x256xf32> to vector<8x256xf32>
    %112 = arith.truncf %109 : vector<8x64xf32> to vector<8x64xbf16>
    %cst_22 = arith.constant dense<0.000000e+00> : vector<8x256xf32>
    %113 = tpu.matmul %112, %16, %cst_22 {dimension_numbers = #tpu.dot_dimension_numbers<[1], [0], [0], [1], [0, 0, 1, 1], [], []>} : vector<8x64xbf16>, vector<64x256xbf16>, vector<8x256xf32> -> vector<8x256xf32>
    %114 = arith.addf %111, %113 : vector<8x256xf32>
    %115 = arith.negf %114 : vector<8x256xf32>
    %116 = math.exp %115 : vector<8x256xf32>
    %cst_23 = arith.constant 1.000000e+00 : f32
    %117 = vector.broadcast %cst_23 : f32 to vector<8x256xf32>
    %118 = arith.addf %117, %116 : vector<8x256xf32>
    %119 = arith.divf %117, %118 : vector<8x256xf32>
    %120 = vector.extract_strided_slice %119 {offsets = [0, 0], sizes = [8, 64], strides = [1, 1]} : vector<8x256xf32> to vector<8x64xf32>
    %121 = vector.extract_strided_slice %119 {offsets = [0, 64], sizes = [8, 64], strides = [1, 1]} : vector<8x256xf32> to vector<8x64xf32>
    %122 = vector.extract_strided_slice %119 {offsets = [0, 128], sizes = [8, 64], strides = [1, 1]} : vector<8x256xf32> to vector<8x64xf32>
    %123 = vector.extract_strided_slice %119 {offsets = [0, 192], sizes = [8, 64], strides = [1, 1]} : vector<8x256xf32> to vector<8x64xf32>
    %cst_24 = arith.constant 2.000000e+00 : f32
    %124 = vector.broadcast %cst_24 : f32 to vector<8x64xf32>
    %125 = arith.mulf %124, %123 : vector<8x64xf32>
    %cst_25 = arith.constant 1.000000e+00 : f32
    %126 = vector.broadcast %cst_25 : f32 to vector<8x64xf32>
    %127 = arith.subf %125, %126 : vector<8x64xf32>
    %128 = arith.mulf %121, %110 : vector<8x64xf32>
    %129 = arith.mulf %120, %127 : vector<8x64xf32>
    %130 = arith.addf %128, %129 : vector<8x64xf32>
    %131 = math.tanh %130 : vector<8x64xf32>
    %132 = arith.mulf %122, %131 : vector<8x64xf32>
    %133 = vector.extract_strided_slice %24 {offsets = [3, 0], sizes = [1, 64], strides = [1, 1]} : vector<8x64xi32> to vector<1x64xi32>
    %134 = vector.broadcast %133 : vector<1x64xi32> to vector<8x64xi32>
    %135 = vector.broadcast %17 : vector<8x1xi32> to vector<8x64xi32>
    %136 = arith.cmpi slt, %134, %135 : vector<8x64xi32>
    %137 = arith.select %136, %132, %109 : vector<8x64xi1>, vector<8x64xf32>
    %138 = arith.select %136, %130, %110 : vector<8x64xi1>, vector<8x64xf32>
    %139 = vector.extract_strided_slice %15 {offsets = [32, 0], sizes = [8, 256], strides = [1, 1]} : vector<64x256xf32> to vector<8x256xf32>
    %140 = arith.truncf %137 : vector<8x64xf32> to vector<8x64xbf16>
    %cst_26 = arith.constant dense<0.000000e+00> : vector<8x256xf32>
    %141 = tpu.matmul %140, %16, %cst_26 {dimension_numbers = #tpu.dot_dimension_numbers<[1], [0], [0], [1], [0, 0, 1, 1], [], []>} : vector<8x64xbf16>, vector<64x256xbf16>, vector<8x256xf32> -> vector<8x256xf32>
    %142 = arith.addf %139, %141 : vector<8x256xf32>
    %143 = arith.negf %142 : vector<8x256xf32>
    %144 = math.exp %143 : vector<8x256xf32>
    %cst_27 = arith.constant 1.000000e+00 : f32
    %145 = vector.broadcast %cst_27 : f32 to vector<8x256xf32>
    %146 = arith.addf %145, %144 : vector<8x256xf32>
    %147 = arith.divf %145, %146 : vector<8x256xf32>
    %148 = vector.extract_strided_slice %147 {offsets = [0, 0], sizes = [8, 64], strides = [1, 1]} : vector<8x256xf32> to vector<8x64xf32>
    %149 = vector.extract_strided_slice %147 {offsets = [0, 64], sizes = [8, 64], strides = [1, 1]} : vector<8x256xf32> to vector<8x64xf32>
    %150 = vector.extract_strided_slice %147 {offsets = [0, 128], sizes = [8, 64], strides = [1, 1]} : vector<8x256xf32> to vector<8x64xf32>
    %151 = vector.extract_strided_slice %147 {offsets = [0, 192], sizes = [8, 64], strides = [1, 1]} : vector<8x256xf32> to vector<8x64xf32>
    %cst_28 = arith.constant 2.000000e+00 : f32
    %152 = vector.broadcast %cst_28 : f32 to vector<8x64xf32>
    %153 = arith.mulf %152, %151 : vector<8x64xf32>
    %cst_29 = arith.constant 1.000000e+00 : f32
    %154 = vector.broadcast %cst_29 : f32 to vector<8x64xf32>
    %155 = arith.subf %153, %154 : vector<8x64xf32>
    %156 = arith.mulf %149, %138 : vector<8x64xf32>
    %157 = arith.mulf %148, %155 : vector<8x64xf32>
    %158 = arith.addf %156, %157 : vector<8x64xf32>
    %159 = math.tanh %158 : vector<8x64xf32>
    %160 = arith.mulf %150, %159 : vector<8x64xf32>
    %161 = vector.extract_strided_slice %24 {offsets = [4, 0], sizes = [1, 64], strides = [1, 1]} : vector<8x64xi32> to vector<1x64xi32>
    %162 = vector.broadcast %161 : vector<1x64xi32> to vector<8x64xi32>
    %163 = vector.broadcast %17 : vector<8x1xi32> to vector<8x64xi32>
    %164 = arith.cmpi slt, %162, %163 : vector<8x64xi32>
    %165 = arith.select %164, %160, %137 : vector<8x64xi1>, vector<8x64xf32>
    %166 = arith.select %164, %158, %138 : vector<8x64xi1>, vector<8x64xf32>
    %167 = vector.extract_strided_slice %15 {offsets = [40, 0], sizes = [8, 256], strides = [1, 1]} : vector<64x256xf32> to vector<8x256xf32>
    %168 = arith.truncf %165 : vector<8x64xf32> to vector<8x64xbf16>
    %cst_30 = arith.constant dense<0.000000e+00> : vector<8x256xf32>
    %169 = tpu.matmul %168, %16, %cst_30 {dimension_numbers = #tpu.dot_dimension_numbers<[1], [0], [0], [1], [0, 0, 1, 1], [], []>} : vector<8x64xbf16>, vector<64x256xbf16>, vector<8x256xf32> -> vector<8x256xf32>
    %170 = arith.addf %167, %169 : vector<8x256xf32>
    %171 = arith.negf %170 : vector<8x256xf32>
    %172 = math.exp %171 : vector<8x256xf32>
    %cst_31 = arith.constant 1.000000e+00 : f32
    %173 = vector.broadcast %cst_31 : f32 to vector<8x256xf32>
    %174 = arith.addf %173, %172 : vector<8x256xf32>
    %175 = arith.divf %173, %174 : vector<8x256xf32>
    %176 = vector.extract_strided_slice %175 {offsets = [0, 0], sizes = [8, 64], strides = [1, 1]} : vector<8x256xf32> to vector<8x64xf32>
    %177 = vector.extract_strided_slice %175 {offsets = [0, 64], sizes = [8, 64], strides = [1, 1]} : vector<8x256xf32> to vector<8x64xf32>
    %178 = vector.extract_strided_slice %175 {offsets = [0, 128], sizes = [8, 64], strides = [1, 1]} : vector<8x256xf32> to vector<8x64xf32>
    %179 = vector.extract_strided_slice %175 {offsets = [0, 192], sizes = [8, 64], strides = [1, 1]} : vector<8x256xf32> to vector<8x64xf32>
    %cst_32 = arith.constant 2.000000e+00 : f32
    %180 = vector.broadcast %cst_32 : f32 to vector<8x64xf32>
    %181 = arith.mulf %180, %179 : vector<8x64xf32>
    %cst_33 = arith.constant 1.000000e+00 : f32
    %182 = vector.broadcast %cst_33 : f32 to vector<8x64xf32>
    %183 = arith.subf %181, %182 : vector<8x64xf32>
    %184 = arith.mulf %177, %166 : vector<8x64xf32>
    %185 = arith.mulf %176, %183 : vector<8x64xf32>
    %186 = arith.addf %184, %185 : vector<8x64xf32>
    %187 = math.tanh %186 : vector<8x64xf32>
    %188 = arith.mulf %178, %187 : vector<8x64xf32>
    %189 = vector.extract_strided_slice %24 {offsets = [5, 0], sizes = [1, 64], strides = [1, 1]} : vector<8x64xi32> to vector<1x64xi32>
    %190 = vector.broadcast %189 : vector<1x64xi32> to vector<8x64xi32>
    %191 = vector.broadcast %17 : vector<8x1xi32> to vector<8x64xi32>
    %192 = arith.cmpi slt, %190, %191 : vector<8x64xi32>
    %193 = arith.select %192, %188, %165 : vector<8x64xi1>, vector<8x64xf32>
    %194 = arith.select %192, %186, %166 : vector<8x64xi1>, vector<8x64xf32>
    %195 = vector.extract_strided_slice %15 {offsets = [48, 0], sizes = [8, 256], strides = [1, 1]} : vector<64x256xf32> to vector<8x256xf32>
    %196 = arith.truncf %193 : vector<8x64xf32> to vector<8x64xbf16>
    %cst_34 = arith.constant dense<0.000000e+00> : vector<8x256xf32>
    %197 = tpu.matmul %196, %16, %cst_34 {dimension_numbers = #tpu.dot_dimension_numbers<[1], [0], [0], [1], [0, 0, 1, 1], [], []>} : vector<8x64xbf16>, vector<64x256xbf16>, vector<8x256xf32> -> vector<8x256xf32>
    %198 = arith.addf %195, %197 : vector<8x256xf32>
    %199 = arith.negf %198 : vector<8x256xf32>
    %200 = math.exp %199 : vector<8x256xf32>
    %cst_35 = arith.constant 1.000000e+00 : f32
    %201 = vector.broadcast %cst_35 : f32 to vector<8x256xf32>
    %202 = arith.addf %201, %200 : vector<8x256xf32>
    %203 = arith.divf %201, %202 : vector<8x256xf32>
    %204 = vector.extract_strided_slice %203 {offsets = [0, 0], sizes = [8, 64], strides = [1, 1]} : vector<8x256xf32> to vector<8x64xf32>
    %205 = vector.extract_strided_slice %203 {offsets = [0, 64], sizes = [8, 64], strides = [1, 1]} : vector<8x256xf32> to vector<8x64xf32>
    %206 = vector.extract_strided_slice %203 {offsets = [0, 128], sizes = [8, 64], strides = [1, 1]} : vector<8x256xf32> to vector<8x64xf32>
    %207 = vector.extract_strided_slice %203 {offsets = [0, 192], sizes = [8, 64], strides = [1, 1]} : vector<8x256xf32> to vector<8x64xf32>
    %cst_36 = arith.constant 2.000000e+00 : f32
    %208 = vector.broadcast %cst_36 : f32 to vector<8x64xf32>
    %209 = arith.mulf %208, %207 : vector<8x64xf32>
    %cst_37 = arith.constant 1.000000e+00 : f32
    %210 = vector.broadcast %cst_37 : f32 to vector<8x64xf32>
    %211 = arith.subf %209, %210 : vector<8x64xf32>
    %212 = arith.mulf %205, %194 : vector<8x64xf32>
    %213 = arith.mulf %204, %211 : vector<8x64xf32>
    %214 = arith.addf %212, %213 : vector<8x64xf32>
    %215 = math.tanh %214 : vector<8x64xf32>
    %216 = arith.mulf %206, %215 : vector<8x64xf32>
    %217 = vector.extract_strided_slice %24 {offsets = [6, 0], sizes = [1, 64], strides = [1, 1]} : vector<8x64xi32> to vector<1x64xi32>
    %218 = vector.broadcast %217 : vector<1x64xi32> to vector<8x64xi32>
    %219 = vector.broadcast %17 : vector<8x1xi32> to vector<8x64xi32>
    %220 = arith.cmpi slt, %218, %219 : vector<8x64xi32>
    %221 = arith.select %220, %216, %193 : vector<8x64xi1>, vector<8x64xf32>
    %222 = arith.select %220, %214, %194 : vector<8x64xi1>, vector<8x64xf32>
    %223 = vector.extract_strided_slice %15 {offsets = [56, 0], sizes = [8, 256], strides = [1, 1]} : vector<64x256xf32> to vector<8x256xf32>
    %224 = arith.truncf %221 : vector<8x64xf32> to vector<8x64xbf16>
    %cst_38 = arith.constant dense<0.000000e+00> : vector<8x256xf32>
    %225 = tpu.matmul %224, %16, %cst_38 {dimension_numbers = #tpu.dot_dimension_numbers<[1], [0], [0], [1], [0, 0, 1, 1], [], []>} : vector<8x64xbf16>, vector<64x256xbf16>, vector<8x256xf32> -> vector<8x256xf32>
    %226 = arith.addf %223, %225 : vector<8x256xf32>
    %227 = arith.negf %226 : vector<8x256xf32>
    %228 = math.exp %227 : vector<8x256xf32>
    %cst_39 = arith.constant 1.000000e+00 : f32
    %229 = vector.broadcast %cst_39 : f32 to vector<8x256xf32>
    %230 = arith.addf %229, %228 : vector<8x256xf32>
    %231 = arith.divf %229, %230 : vector<8x256xf32>
    %232 = vector.extract_strided_slice %231 {offsets = [0, 0], sizes = [8, 64], strides = [1, 1]} : vector<8x256xf32> to vector<8x64xf32>
    %233 = vector.extract_strided_slice %231 {offsets = [0, 64], sizes = [8, 64], strides = [1, 1]} : vector<8x256xf32> to vector<8x64xf32>
    %234 = vector.extract_strided_slice %231 {offsets = [0, 128], sizes = [8, 64], strides = [1, 1]} : vector<8x256xf32> to vector<8x64xf32>
    %235 = vector.extract_strided_slice %231 {offsets = [0, 192], sizes = [8, 64], strides = [1, 1]} : vector<8x256xf32> to vector<8x64xf32>
    %cst_40 = arith.constant 2.000000e+00 : f32
    %236 = vector.broadcast %cst_40 : f32 to vector<8x64xf32>
    %237 = arith.mulf %236, %235 : vector<8x64xf32>
    %cst_41 = arith.constant 1.000000e+00 : f32
    %238 = vector.broadcast %cst_41 : f32 to vector<8x64xf32>
    %239 = arith.subf %237, %238 : vector<8x64xf32>
    %240 = arith.mulf %233, %222 : vector<8x64xf32>
    %241 = arith.mulf %232, %239 : vector<8x64xf32>
    %242 = arith.addf %240, %241 : vector<8x64xf32>
    %243 = math.tanh %242 : vector<8x64xf32>
    %244 = arith.mulf %234, %243 : vector<8x64xf32>
    %245 = vector.extract_strided_slice %24 {offsets = [7, 0], sizes = [1, 64], strides = [1, 1]} : vector<8x64xi32> to vector<1x64xi32>
    %246 = vector.broadcast %245 : vector<1x64xi32> to vector<8x64xi32>
    %247 = vector.broadcast %17 : vector<8x1xi32> to vector<8x64xi32>
    %248 = arith.cmpi slt, %246, %247 : vector<8x64xi32>
    %249 = arith.select %248, %244, %221 : vector<8x64xi1>, vector<8x64xf32>
    %250 = arith.truncf %249 : vector<8x64xf32> to vector<8x64xbf16>
    %c0_42 = arith.constant 0 : index
    %c0_43 = arith.constant 0 : index
    %251 = vector.load %arg4[%c0_42, %c0_43] : memref<64x10xbf16, #tpu.memory_space<vmem>>, vector<64x10xbf16>
    %cst_44 = arith.constant dense<0.000000e+00> : vector<8x10xf32>
    %252 = tpu.matmul %250, %251, %cst_44 {dimension_numbers = #tpu.dot_dimension_numbers<[1], [0], [0], [1], [0, 0, 1, 1], [], []>} : vector<8x64xbf16>, vector<64x10xbf16>, vector<8x10xf32> -> vector<8x10xf32>
    %253 = vector.extract_strided_slice %252 {offsets = [0, 0], sizes = [2, 5], strides = [1, 1]} : vector<8x10xf32> to vector<2x5xf32>
    %254 = vector.extract_strided_slice %252 {offsets = [2, 5], sizes = [2, 5], strides = [1, 1]} : vector<8x10xf32> to vector<2x5xf32>
    %255 = arith.addf %253, %254 : vector<2x5xf32>
    %c0_45 = arith.constant 0 : index
    %c0_46 = arith.constant 0 : index
    %256 = vector.load %arg5[%c0_45, %c0_46] : memref<1x5xf32, #tpu.memory_space<vmem>>, vector<1x5xf32>
    %257 = vector.broadcast %256 : vector<1x5xf32> to vector<2x5xf32>
    %258 = arith.addf %255, %257 : vector<2x5xf32>
    %c0_47 = arith.constant 0 : index
    %c0_48 = arith.constant 0 : index
    %259 = vector.load %arg6[%c0_47, %c0_48] : memref<2x5xf32, #tpu.memory_space<vmem>>, vector<2x5xf32>
    tpu.vector_store %arg6[%c0_47, %c0_48], %258 {strides = array<i32>} : memref<2x5xf32, #tpu.memory_space<vmem>>, vector<2x5xf32>,
    return
  }
}

</mosaic_0001>

<bundles_post_ra>
// kernel: tpu_custom_call.1
= control target key start
LH: loop header
LB: loop body
LE: loop exit
PB: predicated region body
PF: predicated region fallthrough
CT: control target
= control target key end

     0   :  { %11 = vsyncpa [#allocation3], 0  ;;  %s1913_s0 = inlined_call_operand.vmem [shape: s32[64,2], index: 0, kind: input, shape index: {}]   ;;  %s1914_s1 = inlined_call_operand.vmem [shape: s32[8,1], index: 1, kind: input, shape index: {}]   ;;  %s1915_s2 = inlined_call_operand.hbm [shape: bf16[128,256], index: 2, kind: input, shape index: {}]   ;;  %s1916_s3 = inlined_call_operand.vmem [shape: bf16[64,256], index: 3, kind: input, shape index: {}]   ;;  %s1917_s4 = inlined_call_operand.vmem [shape: bf16[64,10], index: 4, kind: input, shape index: {}]   ;;  %s1918_s5 = inlined_call_operand.vmem [shape: f32[1,5], index: 5, kind: input, shape index: {}]   ;;  %s1919_s6 = inlined_call_operand.hbm [shape: f32[2,5], index: 6, kind: output, shape index: {}]  }
   0x1   :  { %12 = vsyncpa [#allocation4], 0  ;;  %s1503_s21 = smov [#allocation2]   ;;  %s1455_s25 = scalar_lea.hbm %s1915_s2, 2048 }
   0x2   :  { %s22_s22 = sshll.u32 %s1503_s21, 4  ;;  %p1456_p0 = scmp.ne.s32.totalorder %s1915_s2, %s1455_s25  ;;  %s23_s22 = int_to_ptr.vmem [resolvable:$true] %s22_s22 }
   0x3   :  { %p1459_p1 = scmp.lt.u32.totalorder %s1455_s25, %s1915_s2 }
   0x5   :  { %p1461_p2 = pnand %p1459_p1, %p1456_p0 }
   0x7   :  { %1464 = shalt.err (!%p1461_p2)
}
   0x8   :  { %s1465_s30 = scalar_lea.vmem %s23_s22, 2048  ;;  %p1470_p4 = scmp.lt.s32.totalorder %s23_s22, %s23_s22 }
   0x9   :  { %p1466_p3 = scmp.ne.s32.totalorder %s23_s22, %s1465_s30  ;;  %p1471_p5 = scmp.lt.s32.totalorder %s1465_s30, %s1465_s30 }
   0xb   :  { %p1472_p6 = por %p1471_p5, %p1470_p4 }
   0xd   :  { %p1473_p7 = pnand %p1472_p6, %p1466_p3 }
   0xf   :  { %1476 = shalt.err (!%p1473_p7)
}
  0x10   :  { %s1504_s7 = smov 128   ;;  %s1505_s8 = smov 8  }
  0x11   :  { %28 = dma.hbm_to_vmem [thread:$0]  %s1915_s2, 2048, %s23_s22, [#allocation3], %s1504_s7, %s1504_s7, %s1505_s8  }
  0x12   :  { %1499 = dma.done.wait [#allocation3], 2048  }
  0x13   :  { %1500 = vsyncadd [#allocation3], 4294965248  ;;  %v1506_v0 = vmov 1   ;;  %v1507_v1 = vmov 0   ;;  %v41_v2 = vld [vmem:[%s1913_s0] sm:$0xff]  ;;  %v42_v3 = vld [vmem:[%s1913_s0 + $0x8] sm:$0xff]  ;;  %v39_v28 = vlaneseq }
  0x14   :  { %1324 = vset.pattern.permute.xlu1 %v1506_v0  ;;  %1323 = vset.pattern.permute.xlu0 %v1507_v1  ;;  %v1335_v4 = vld [vmem:[#allocation2 + $0x4] ss:$8 sps:$4 sm:$0xff]   ;;  %v1337_v5 = vld [vmem:[#allocation2] ss:$8 sps:$4 sm:$0xff]   ;;  %v1338_v6 = vld [vmem:[#allocation2 + $0x14] ss:$8 sps:$4 sm:$0xff]  }
  0x15   :  { %409 = vmatprep.mubr.bf16.mxu1 %v1507_v1  ;;  %278 = vmatprep.mubr.bf16.mxu0 %v1507_v1  ;;  %v1340_v7 = vld [vmem:[#allocation2 + $0x10] ss:$8 sps:$4 sm:$0xff]   ;;  %v1341_v8 = vld [vmem:[#allocation2 + $0x24] ss:$8 sps:$4 sm:$0xff]   ;;  %v1579_v10 = vld [vmem:[%s1916_s3] ss:$8 sps:$4 sm:$0xff]  }
  0x16   :  { %82 = vperm.xlu1 %1324, %v41_v2   ;;  %50 = vperm.xlu0 %1323, %v41_v2   ;;  %v1574_v9 = vld [vmem:[%s1916_s3 + $0x4] ss:$8 sps:$4 sm:$0xff]   ;;  %v1343_v11 = vld [vmem:[#allocation2 + $0x20] ss:$8 sps:$4 sm:$0xff]   ;;  %v1344_v12 = vld [vmem:[#allocation2 + $0x34] ss:$8 sps:$4 sm:$0xff]  }
  0x17   :  { %246 = vmatprep.subr.bf16.mxu0 %v1335_v4  ;;  %377 = vmatprep.subr.bf16.mxu1 %v1574_v9  ;;  %v1586_v13 = vld [vmem:[%s1916_s3 + $0x14] ss:$8 sps:$4 sm:$0xff]   ;;  %v1591_v14 = vld [vmem:[%s1916_s3 + $0x10] ss:$8 sps:$4 sm:$0xff]   ;;  %v1598_v16 = vld [vmem:[%s1916_s3 + $0x24] ss:$8 sps:$4 sm:$0xff]  }
  0x18   :  { %247 = vmatpush1.bf16.msra.mxu0 %v1337_v5  ;;  %378 = vmatpush1.bf16.msra.mxu1 %v1579_v10  ;;  %v1346_v15 = vld [vmem:[#allocation2 + $0x30] ss:$8 sps:$4 sm:$0xff]   ;;  %v1350_v17 = vld [vmem:[#allocation2 + $0x44] ss:$8 sps:$4 sm:$0xff]   ;;  %v1604_v18 = vld [vmem:[%s1916_s3 + $0x20] ss:$8 sps:$4 sm:$0xff]  }
  0x19   :  { %248 = vmatprep.subr.bf16.mxu0 %v1338_v6  ;;  %379 = vmatprep.subr.bf16.mxu1 %v1586_v13  ;;  %v1610_v19 = vld [vmem:[%s1916_s3 + $0x34] ss:$8 sps:$4 sm:$0xff]   ;;  %v1352_v20 = vld [vmem:[#allocation2 + $0x40] ss:$8 sps:$4 sm:$0xff]   ;;  %v1615_v22 = vld [vmem:[%s1916_s3 + $0x30] ss:$8 sps:$4 sm:$0xff]  }
  0x1a   :  { %85 = vperm.xlu1 %1324, %v42_v3   ;;  %53 = vperm.xlu0 %1323, %v42_v3   ;;  %v1356_v21 = vld [vmem:[#allocation2 + $0x54] ss:$8 sps:$4 sm:$0xff]   ;;  %v1358_v23 = vld [vmem:[#allocation2 + $0x50] ss:$8 sps:$4 sm:$0xff]   ;;  %v1362_v24 = vld [vmem:[#allocation2 + $0x64] ss:$8 sps:$4 sm:$0xff]  }
  0x1b   :  { %v1364_v25 = vld [vmem:[#allocation2 + $0x60] ss:$8 sps:$4 sm:$0xff]   ;;  %v1368_v26 = vld [vmem:[#allocation2 + $0x74] ss:$8 sps:$4 sm:$0xff]   ;;  %v1370_v27 = vld [vmem:[#allocation2 + $0x70] ss:$8 sps:$4 sm:$0xff]  }
  0x1c   :  { %249 = vmatpush1.bf16.msra.mxu0 %v1340_v7  ;;  %380 = vmatpush1.bf16.msra.mxu1 %v1591_v14  ;;  %v1632_v29 = vand.u32 127, %v39_v28  ;;  %v1508_v34 = vmov 1.0|1.0   ;;  %v329_v50 = vshrl.u32 %v39_v28, 7  ;;  %s1509_s3 = smov 64   ;;  %v327_v55 = vld [vmem:[%s1914_s1] sm:$0xff] }
  0x1d   :  { %250 = vmatprep.subr.bf16.mxu0 %v1341_v8  ;;  %381 = vmatprep.subr.bf16.mxu1 %v1598_v16  ;;  %vm373_vm12 = vcmask 523264   ;;  %s1513_s27 = smov [#allocation5]  }
  0x1e   :  { %1325 = vset.pattern.permute.xlu1 %v1507_v1  ;;  %vm121_vm2 = vcmp.eq.s32.totalorder %v1632_v29, 127  ;;  %v331_v52 = vsub.s32 7, %v329_v50  ;;  %vm330_vm10 = vcmp.lt.s32.totalorder %v1632_v29, 32  ;;  %v549_v53 = vsub.s32 1, %v329_v50  ;;  %s1209_s28 = sshll.u32 %s1513_s27, 4  ;;  %s1210_s28 = int_to_ptr.vmem [resolvable:$true] %s1209_s28 }
  0x1f   :  { %v642_v54 = vsub.s32 2, %v329_v50  ;;  %v735_v57 = vsub.s32 3, %v329_v50  ;;  %v828_v58 = vsub.s32 4, %v329_v50  ;;  %v921_v59 = vsub.s32 5, %v329_v50  ;;  %s1477_s29 = scalar_lea.vmem %s1210_s28, 32  ;;  %p1482_p9 = scmp.lt.s32.totalorder %s1210_s28, %s1210_s28 }
  0x20   :  { %251 = vmatpush1.bf16.msra.mxu0 %v1343_v11  ;;  %382 = vmatpush1.bf16.msra.mxu1 %v1604_v18  ;;  %v332_v56 = vsel %vm330_vm10, %v329_v50, %v331_v52  ;;  %v1014_v62 = vsub.s32 6, %v329_v50  ;;  %p1478_p8 = scmp.ne.s32.totalorder %s1210_s28, %s1477_s29  ;;  %p1483_p10 = scmp.lt.s32.totalorder %s1477_s29, %s1477_s29 }
  0x21   :  { %252 = vmatprep.subr.bf16.mxu0 %v1344_v12  ;;  %383 = vmatprep.subr.bf16.mxu1 %v1610_v19  ;;  %v1662_v60 = vrot.slane %v332_v56, %v549_v53  ;;  %v1664_v61 = vrot.slane %v332_v56, %v642_v54  ;;  %v1666_v63 = vrot.slane %v332_v56, %v735_v57  ;;  %v44_v54 = vld [vmem:[%s1913_s0 + $0x18] sm:$0xff] }
  0x22   :  { %v1668_v2 = vrot.slane %v332_v56, %v828_v58  ;;  %v1670_v3 = vrot.slane %v332_v56, %v921_v59  ;;  %v1672_v4 = vrot.slane %v332_v56, %v331_v52  ;;  %v1674_v5 = vrot.slane %v332_v56, %v1014_v62  ;;  %p1484_p11 = por %p1483_p10, %p1482_p9 }
  0x24   :  { %253 = vmatpush1.bf16.msra.mxu0 %v1346_v15  ;;  %384 = vmatpush1.bf16.msra.mxu1 %v1615_v22  ;;  %p1485_p12 = pnand %p1484_p11, %p1478_p8 }
  0x25   :  { %254 = vmatprep.subr.bf16.mxu0 %v1350_v17  ;;  %469 = vmatprep.subr.bf16.mxu1 %v1574_v9 }
  0x27   :  { %410 = vmatmul.mubr.bf16.vlgmr.msra.gmra.mrb[0].mxu1 %v1507_v1 }
  0x28   :  { %255 = vmatpush1.bf16.msra.mxu0 %v1352_v20  ;;  %470 = vmatpush1.bf16.msra.mxu1 %v1579_v10 }
  0x29   :  { %256 = vmatprep.subr.bf16.mxu0 %v1356_v21  ;;  %471 = vmatprep.subr.bf16.mxu1 %v1586_v13 }
  0x2a   :  { %501 = vmatprep.mubr.bf16.mxu1 %v1507_v1 }
  0x2c   :  { %257 = vmatpush1.bf16.msra.mxu0 %v1358_v23  ;;  %472 = vmatpush1.bf16.msra.mxu1 %v1591_v14 }
  0x2d   :  { %258 = vmatprep.subr.bf16.mxu0 %v1362_v24  ;;  %473 = vmatprep.subr.bf16.mxu1 %v1598_v16  ;;  %v453_v24 = vsub.s32 0, %v329_v50 }
  0x30   :  { %259 = vmatpush1.bf16.msra.mxu0 %v1364_v25  ;;  %474 = vmatpush1.bf16.msra.mxu1 %v1604_v18 }
  0x31   :  { %260 = vmatprep.subr.bf16.mxu0 %v1368_v26  ;;  %475 = vmatprep.subr.bf16.mxu1 %v1610_v19  ;;  %v454_v26 = vrot.slane %v332_v56, %v453_v24 }
  0x34   :  { %261 = vmatpush1.bf16.msra.mxu0 %v1370_v27  ;;  %476 = vmatpush1.bf16.msra.mxu1 %v1615_v22 }
  0x35   :  { %655 = vmatprep.subr.bf16.mxu0 %v1574_v9  ;;  %562 = vmatprep.subr.bf16.mxu1 %v1574_v9 }
  0x95   :  { %v83_v30 = vpop.permute.xlu1 %82  ;;  %v51_v31 = vpop.permute.xlu0 %50 }
  0x96   :  { %vm105_vm0 = vcmp.eq.s32.totalorder %v1632_v29, %v83_v30  ;;  %vm73_vm1 = vcmp.eq.s32.totalorder %v1632_v29, %v51_v31  ;;  %v43_v30 = vld [vmem:[%s1913_s0 + $0x10] sm:$0xff] }
  0x97   :  { %vm113_vm3 = vmor %vm73_vm1, %vm105_vm0 }
  0x98   :  { %vm122_vm4 = vmor %vm113_vm3, %vm121_vm2 }
  0x99   :  { %v86_v32 = vpop.permute.xlu1 %85  ;;  %v54_v33 = vpop.permute.xlu0 %53 }
  0x9a   :  { %vm106_vm5 = vcmp.eq.s32.totalorder %v1632_v29, %v86_v32  ;;  %vm74_vm6 = vcmp.eq.s32.totalorder %v1632_v29, %v54_v33 }
  0x9b   :  { %vm114_vm7 = vmor %vm74_vm6, %vm106_vm5 }
  0x9c   :  { %vm123_vm8 = vmor %vm114_vm7, %vm121_vm2 }
  0x9d   :  { %vm1242_vm9 = vmpackc.low %vm123_vm8, %vm122_vm4 }
  0x9e   :  { %1243 = vmatmul.mubr.msk.bf16.vlgmr.msra.gmra.mrb[0].mxu0 %vm1242_vm9, %v1508_v34 }
  0x9f   :  { %288 = vmatprep.mubr.bf16.mxu0 %v1507_v1  ;;  %656 = vmatpush1.bf16.msra.mxu0 %v1579_v10 }
  0xa0   :  { %657 = vmatprep.subr.bf16.mxu0 %v1586_v13 }
  0xa3   :  { %658 = vmatpush1.bf16.msra.mxu0 %v1591_v14 }
  0xa4   :  { %659 = vmatprep.subr.bf16.mxu0 %v1598_v16 }
  0xa7   :  { %660 = vmatpush1.bf16.msra.mxu0 %v1604_v18 }
  0xa8   :  { %661 = vmatprep.subr.bf16.mxu0 %v1610_v19 }
  0xab   :  { %662 = vmatpush1.bf16.msra.mxu0 %v1615_v22 }
  0xac   :  { %841 = vmatprep.subr.bf16.mxu0 %v1574_v9 }
  0xfa   :  { %v411_v35 = vpop.f32.mrb[0].mxu1 }
  0xfb   :  { %v413_v36 = vpop.f32.mrb[1].mxu1 }
  0xfc   :  { %v415_v37 = vpop.f32.mrb[2].mxu1 }
  0xfd   :  { %v416_v38 = vpop.f32.mrb[3].mxu1 }
 0x171   :  { %v280_v39 = vpop.f32.mrb[0].mxu0 }
 0x172   :  { %v418_v40 = vadd.f32 %v411_v35, %v280_v39  ;;  %v282_v41 = vpop.f32.mrb[1].mxu0 }
 0x173   :  { %v419_v42 = vadd.f32 %v413_v36, %v282_v41  ;;  %v1653_v43 = vpop.f32.mrb[2].mxu0 }
 0x174   :  { %v1655_v44 = vpop.f32.mrb[3].mxu0  ;;  %v1258_v6 = vmul.f32 -1.442695, %v418_v40 }
 0x175   :  { %v1259_v45 = vmul.f32 -1.442695, %v419_v42 }
 0x177   :  { %1375 = vpow2.f32 %v1259_v45 }
 0x181   :  { %v1376_v46 = vpop.eup %1375 }
 0x182   :  { %v427_v47 = vadd.f32 1.0, %v1376_v46 }
 0x184   :  { %1377 = vrcp.f32 %v427_v47 }
 0x185   :  { %1379 = vpow2.f32 %v1258_v6 }
 0x18e   :  { %v1378_v48 = vpop.eup %1377 }
 0x18f   :  { %v432_v49 = vmul.f32 2.0, %v1378_v48  ;;  %v1380_v7 = vpop.eup %1379 }
 0x190   :  { %v426_v8 = vadd.f32 1.0, %v1380_v7 }
 0x191   :  { %v1260_v51 = vadd.f32 -1.0, %v432_v49 }
 0x192   :  { %1381 = vrcp.f32 %v426_v8 }
 0x193   :  { %436 = vrot.lane.b32.xlu0 %v1260_v51, %s1509_s3 }
 0x197   :  { %456 = vperm.xlu0 %1323, %v327_v55  }
 0x19c   :  { %v1382_v11 = vpop.eup %1381 }
 0x19d   :  { %v434_v17 = vmul.f32 0.0, %v1382_v11 }
 0x205   :  { %v437_v12 = vpop.permute.xlu0 %436 }
 0x206   :  { %v439_v15 = vmul.f32 %v1382_v11, %v437_v12 }
 0x208   :  { %441 = vrot.lane.b32.xlu1 %v439_v15, %s1509_s3 }
 0x216   :  { %v1679_v25 = vpop.permute.xlu0 %456 }
 0x217   :  { %vm458_vm11 = vcmp.lt.s32.totalorder %v454_v26, %v1679_v25  ;;  %vm551_vm7 = vcmp.lt.s32.totalorder %v1662_v60, %v1679_v25 }
 0x27a   :  { %v442_v20 = vpop.permute.xlu1 %441 }
 0x27b   :  { %v444_v21 = vadd.f32 %v442_v20, %v434_v17 }
 0x27d   :  { %1383 = vtanh.f32 %v444_v21  ;;  %461 = vrot.lane.b32.xlu0 %v444_v21, %s1509_s3 }
 0x287   :  { %v1384_v23 = vpop.eup %1383 }
 0x288   :  { %447 = vrot.lane.b32.xlu1 %v1384_v23, %s1509_s3 }
 0x2ef   :  { %v462_v27 = vpop.permute.xlu0 %461 }
 0x2f0   :  { %v1682_v28 = vsel %vm458_vm11, %v462_v27, 0.0 }
 0x2f1   :  { %527 = vrot.lane.b32.xlu0 %v1682_v28, %s1509_s3 }
 0x2f5   :  { %56 = vperm.xlu0 %1323, %v43_v30  }
 0x2f9   :  { %1326 = vset.pattern.permute.xlu0 %v1506_v0 }
 0x2fa   :  { %v448_v31 = vpop.permute.xlu1 %447  ;;  %88 = vperm.xlu0 %1326, %v43_v30  }
 0x2fb   :  { %v450_v32 = vmul.f32 %v1378_v48, %v448_v31 }
 0x2fd   :  { %v1690_v33 = vsel %vm458_vm11, %v450_v32, 0.0 }
 0x2fe   :  { %v465_v35 = vpack.c.bf16 %v1690_v33, %v1690_v33  ;;  %1328 = vset.pattern.permute.xlu0 %v1507_v1 }
 0x300   :  { %1261 = vmatmul.mubr.msk.bf16.vlgmr.msra.gmra.mrb[4].mxu1 %vm373_vm12, %v465_v35 }
 0x301   :  { %563 = vmatpush1.bf16.msra.mxu1 %v1579_v10  ;;  %594 = vmatprep.mubr.bf16.mxu1 %v1507_v1 }
 0x302   :  { %564 = vmatprep.subr.bf16.mxu1 %v1586_v13 }
 0x305   :  { %565 = vmatpush1.bf16.msra.mxu1 %v1591_v14 }
 0x306   :  { %566 = vmatprep.subr.bf16.mxu1 %v1598_v16 }
 0x309   :  { %567 = vmatpush1.bf16.msra.mxu1 %v1604_v18 }
 0x30a   :  { %568 = vmatprep.subr.bf16.mxu1 %v1610_v19 }
 0x30d   :  { %569 = vmatpush1.bf16.msra.mxu1 %v1615_v22 }
 0x30e   :  { %748 = vmatprep.subr.bf16.mxu1 %v1574_v9 }
 0x363   :  { %v528_v55 = vpop.permute.xlu0 %527 }
 0x374   :  { %v57_v59 = vpop.permute.xlu0 %56 }
 0x375   :  { %vm75_vm14 = vcmp.eq.s32.totalorder %v1632_v29, %v57_v59 }
 0x379   :  { %v89_v6 = vpop.permute.xlu0 %88 }
 0x37a   :  { %vm107_vm13 = vcmp.eq.s32.totalorder %v1632_v29, %v89_v6 }
 0x37b   :  { %vm115_vm15 = vmor %vm75_vm14, %vm107_vm13 }
 0x37c   :  { %vm124_vm1 = vmor %vm115_vm15, %vm121_vm2 }
 0x3d3   :  { %v503_v36 = vpop.f32.mrb[4].mxu1 }
 0x3d4   :  { %v510_v37 = vadd.f32 %v503_v36, %v1653_v43  ;;  %v505_v38 = vpop.f32.mrb[5].mxu1 }
 0x3d5   :  { %v511_v39 = vadd.f32 %v505_v38, %v1655_v44  ;;  %v507_v40 = vpop.f32.mrb[6].mxu1  ;;  %v45_v38 = vld [vmem:[%s1913_s0 + $0x20] sm:$0xff] }
 0x3d6   :  { %v508_v41 = vpop.f32.mrb[7].mxu1  ;;  %v1262_v50 = vmul.f32 -1.442695, %v510_v37 }
 0x3d7   :  { %v1263_v42 = vmul.f32 -1.442695, %v511_v39 }
 0x3d9   :  { %1385 = vpow2.f32 %v1263_v42  ;;  %v46_v42 = vld [vmem:[%s1913_s0 + $0x28] sm:$0xff] }
 0x3e3   :  { %v1386_v45 = vpop.eup %1385 }
 0x3e4   :  { %v519_v46 = vadd.f32 1.0, %v1386_v45  ;;  %v47_v45 = vld [vmem:[%s1913_s0 + $0x30] sm:$0xff] }
 0x3e6   :  { %1387 = vrcp.f32 %v519_v46 }
 0x3e7   :  { %1389 = vpow2.f32 %v1262_v50 }
 0x3f0   :  { %v1388_v47 = vpop.eup %1387 }
 0x3f1   :  { %v524_v48 = vmul.f32 2.0, %v1388_v47  ;;  %v1390_v51 = vpop.eup %1389 }
 0x3f2   :  { %v518_v52 = vadd.f32 1.0, %v1390_v51 }
 0x3f3   :  { %v1264_v49 = vadd.f32 -1.0, %v524_v48 }
 0x3f4   :  { %1391 = vrcp.f32 %v518_v52  ;;  %v48_v52 = vld [vmem:[%s1913_s0 + $0x38] sm:$0xff] }
 0x3f5   :  { %532 = vrot.lane.b32.xlu1 %v1264_v49, %s1509_s3 }
 0x3fe   :  { %v1392_v43 = vpop.eup %1391 }
 0x3ff   :  { %v530_v56 = vmul.f32 %v1392_v43, %v528_v55 }
 0x467   :  { %v533_v53 = vpop.permute.xlu1 %532 }
 0x468   :  { %v535_v44 = vmul.f32 %v1392_v43, %v533_v53 }
 0x46a   :  { %537 = vrot.lane.b32.xlu1 %v535_v44, %s1509_s3 }
 0x46e   :  { %59 = vperm.xlu1 %1325, %v44_v54  }
 0x472   :  { %1327 = vset.pattern.permute.xlu1 %v1506_v0 }
 0x473   :  { %91 = vperm.xlu1 %1327, %v44_v54  }
 0x477   :  { %1329 = vset.pattern.permute.xlu1 %v1507_v1 }
 0x4dc   :  { %v538_v57 = vpop.permute.xlu1 %537 }
 0x4dd   :  { %v540_v58 = vadd.f32 %v538_v57, %v530_v56 }
 0x4df   :  { %1393 = vtanh.f32 %v540_v58  ;;  %554 = vrot.lane.b32.xlu0 %v540_v58, %s1509_s3 }
 0x4e9   :  { %v1394_v62 = vpop.eup %1393 }
 0x4ea   :  { %543 = vrot.lane.b32.xlu1 %v1394_v62, %s1509_s3 }
 0x4ed   :  { %v60_v7 = vpop.permute.xlu1 %59 }
 0x4ee   :  { %vm76_vm0 = vcmp.eq.s32.totalorder %v1632_v29, %v60_v7 }
 0x4f2   :  { %v92_v8 = vpop.permute.xlu1 %91 }
 0x4f3   :  { %vm108_vm3 = vcmp.eq.s32.totalorder %v1632_v29, %v92_v8 }
 0x4f4   :  { %vm116_vm4 = vmor %vm76_vm0, %vm108_vm3 }
 0x4f5   :  { %vm125_vm5 = vmor %vm116_vm4, %vm121_vm2 }
 0x4f6   :  { %vm1244_vm6 = vmpackc.low %vm125_vm5, %vm124_vm1 }
 0x4f7   :  { %1245 = vmatmul.mubr.msk.bf16.gmra.mrb[4].mxu0 %vm1244_vm6, %v1508_v34 }
 0x4f8   :  { %298 = vmatprep.mubr.bf16.mxu0 %v1507_v1 }
 0x551   :  { %v555_v11 = vpop.permute.xlu0 %554 }
 0x552   :  { %v1729_v12 = vsel %vm551_vm7, %v555_v11, %v1682_v28 }
 0x553   :  { %620 = vrot.lane.b32.xlu0 %v1729_v12, %s1509_s3 }
 0x557   :  { %62 = vperm.xlu0 %1328, %v45_v38  }
 0x55b   :  { %1331 = vset.pattern.permute.xlu0 %v1506_v0 }
 0x55c   :  { %v544_v15 = vpop.permute.xlu1 %543  ;;  %97 = vperm.xlu0 %1331, %v46_v42  }
 0x55d   :  { %v546_v17 = vmul.f32 %v1388_v47, %v544_v15 }
 0x55f   :  { %v1734_v20 = vsel %vm551_vm7, %v546_v17, %v1690_v33 }
 0x560   :  { %v558_v21 = vpack.c.bf16 %v1734_v20, %v1734_v20  ;;  %100 = vperm.xlu0 %1331, %v47_v45  }
 0x562   :  { %1265 = vmatmul.mubr.msk.bf16.vlgmr.msra.gmra.mrb[8].mxu1 %vm373_vm12, %v558_v21 }
 0x563   :  { %749 = vmatpush1.bf16.msra.mxu1 %v1579_v10  ;;  %780 = vmatprep.mubr.bf16.mxu1 %v1507_v1 }
 0x564   :  { %750 = vmatprep.subr.bf16.mxu1 %v1586_v13  ;;  %1334 = vset.pattern.permute.xlu0 %v1507_v1 }
 0x567   :  { %751 = vmatpush1.bf16.msra.mxu1 %v1591_v14 }
 0x568   :  { %752 = vmatprep.subr.bf16.mxu1 %v1598_v16 }
 0x56b   :  { %753 = vmatpush1.bf16.msra.mxu1 %v1604_v18 }
 0x56c   :  { %754 = vmatprep.subr.bf16.mxu1 %v1610_v19 }
 0x56f   :  { %755 = vmatpush1.bf16.msra.mxu1 %v1615_v22 }
 0x570   :  { %934 = vmatprep.subr.bf16.mxu1 %v1574_v9 }
 0x5c5   :  { %v621_v43 = vpop.permute.xlu0 %620 }
 0x5ca   :  { %v290_v60 = vpop.f32.mrb[4].mxu0 }
 0x5cb   :  { %v292_v23 = vpop.f32.mrb[5].mxu0 }
 0x5cc   :  { %v1748_v24 = vpop.f32.mrb[6].mxu0 }
 0x5cd   :  { %v1750_v26 = vpop.f32.mrb[7].mxu0 }
 0x5d6   :  { %v63_v55 = vpop.permute.xlu0 %62 }
 0x5d7   :  { %vm77_vm11 = vcmp.eq.s32.totalorder %v1632_v29, %v63_v55 }
 0x5db   :  { %v98_v57 = vpop.permute.xlu0 %97 }
 0x5dc   :  { %vm110_vm8 = vcmp.eq.s32.totalorder %v1632_v29, %v98_v57 }
 0x5df   :  { %v101_v62 = vpop.permute.xlu0 %100 }
 0x5e0   :  { %vm111_vm4 = vcmp.eq.s32.totalorder %v1632_v29, %v101_v62 }
 0x635   :  { %v596_v27 = vpop.f32.mrb[8].mxu1 }
 0x636   :  { %v603_v28 = vadd.f32 %v596_v27, %v290_v60  ;;  %v598_v30 = vpop.f32.mrb[9].mxu1 }
 0x637   :  { %v604_v31 = vadd.f32 %v598_v30, %v292_v23  ;;  %v600_v32 = vpop.f32.mrb[10].mxu1 }
 0x638   :  { %v601_v33 = vpop.f32.mrb[11].mxu1  ;;  %v1266_v46 = vmul.f32 -1.442695, %v603_v28 }
 0x639   :  { %v1267_v35 = vmul.f32 -1.442695, %v604_v31 }
 0x63b   :  { %1395 = vpow2.f32 %v1267_v35 }
 0x645   :  { %v1396_v36 = vpop.eup %1395 }
 0x646   :  { %v612_v37 = vadd.f32 1.0, %v1396_v36 }
 0x648   :  { %1397 = vrcp.f32 %v612_v37 }
 0x649   :  { %1399 = vpow2.f32 %v1266_v46 }
 0x652   :  { %v1755_v39 = vpop.eup %1397 }
 0x653   :  { %v617_v40 = vmul.f32 2.0, %v1755_v39  ;;  %v1400_v47 = vpop.eup %1399 }
 0x654   :  { %v611_v48 = vadd.f32 1.0, %v1400_v47 }
 0x655   :  { %v1268_v41 = vadd.f32 -1.0, %v617_v40 }
 0x656   :  { %1401 = vrcp.f32 %v611_v48 }
 0x657   :  { %625 = vrot.lane.b32.xlu1 %v1268_v41, %s1509_s3 }
 0x660   :  { %v1402_v49 = vpop.eup %1401 }
 0x661   :  { %v623_v53 = vmul.f32 %v1402_v49, %v621_v43 }
 0x6c9   :  { %v626_v50 = vpop.permute.xlu1 %625 }
 0x6ca   :  { %v628_v51 = vmul.f32 %v1402_v49, %v626_v50 }
 0x6cc   :  { %630 = vrot.lane.b32.xlu1 %v628_v51, %s1509_s3 }
 0x6d0   :  { %65 = vperm.xlu1 %1329, %v46_v42  }
 0x6d4   :  { %1330 = vset.pattern.permute.xlu1 %v1506_v0 }
 0x6d5   :  { %94 = vperm.xlu1 %1330, %v45_v38  }
 0x6d9   :  { %1332 = vset.pattern.permute.xlu1 %v1507_v1 }
 0x6da   :  { %68 = vperm.xlu1 %1332, %v47_v45  }
 0x6de   :  { %71 = vperm.xlu1 %1332, %v48_v52  }
 0x6e2   :  { %1333 = vset.pattern.permute.xlu1 %v1506_v0 }
 0x6e3   :  { %103 = vperm.xlu1 %1333, %v48_v52  }
 0x73e   :  { %v631_v44 = vpop.permute.xlu1 %630 }
 0x73f   :  { %v633_v54 = vadd.f32 %v631_v44, %v623_v53 }
 0x741   :  { %1403 = vtanh.f32 %v633_v54  ;;  %647 = vrot.lane.b32.xlu1 %v633_v54, %s1509_s3 }
 0x74b   :  { %v1404_v56 = vpop.eup %1403 }
 0x74c   :  { %636 = vrot.lane.b32.xlu0 %v1404_v56, %s1509_s3 }
 0x74f   :  { %v66_v58 = vpop.permute.xlu1 %65 }
 0x750   :  { %vm78_vm9 = vcmp.eq.s32.totalorder %v1632_v29, %v66_v58 }
 0x751   :  { %vm118_vm10 = vmor %vm78_vm9, %vm110_vm8 }
 0x752   :  { %vm127_vm14 = vmor %vm118_vm10, %vm121_vm2 }
 0x754   :  { %v95_v0 = vpop.permute.xlu1 %94 }
 0x755   :  { %vm109_vm13 = vcmp.eq.s32.totalorder %v1632_v29, %v95_v0 }
 0x756   :  { %vm117_vm15 = vmor %vm77_vm11, %vm109_vm13  ;;  %vm644_vm13 = vcmp.lt.s32.totalorder %v1664_v61, %v1679_v25 }
 0x757   :  { %vm126_vm0 = vmor %vm117_vm15, %vm121_vm2  ;;  %vm923_vm15 = vcmp.lt.s32.totalorder %v1670_v3, %v1679_v25 }
 0x758   :  { %vm1246_vm1 = vmpackc.low %vm127_vm14, %vm126_vm0  ;;  %vm830_vm14 = vcmp.lt.s32.totalorder %v1668_v2, %v1679_v25  ;;  %vm1016_vm0 = vcmp.lt.s32.totalorder %v1674_v5, %v1679_v25 }
 0x759   :  { %v69_v59 = vpop.permute.xlu1 %68  ;;  %1247 = vmatmul.mubr.msk.bf16.gmra.mrb[8].mxu0 %vm1246_vm1, %v1508_v34  ;;  %vm1511_vm1 = vmmov 0  }
 0x75a   :  { %308 = vmatprep.mubr.bf16.mxu0 %v1507_v1  ;;  %vm79_vm3 = vcmp.eq.s32.totalorder %v1632_v29, %v69_v59 }
 0x75b   :  { %vm119_vm5 = vmor %vm79_vm3, %vm111_vm4  ;;  %vm1109_vm3 = vcmp.lt.s32.totalorder %v1672_v4, %v1679_v25  ;;  %vm1201_vm4 = vcmask 33792  }
 0x75c   :  { %vm128_vm7 = vmor %vm119_vm5, %vm121_vm2 }
 0x75d   :  { %v72_v6 = vpop.permute.xlu1 %71 }
 0x75e   :  { %vm80_vm6 = vcmp.eq.s32.totalorder %v1632_v29, %v72_v6 }
 0x762   :  { %v104_v7 = vpop.permute.xlu1 %103 }
 0x763   :  { %vm112_vm8 = vcmp.eq.s32.totalorder %v1632_v29, %v104_v7 }
 0x764   :  { %vm120_vm9 = vmor %vm80_vm6, %vm112_vm8 }
 0x765   :  { %vm129_vm10 = vmor %vm120_vm9, %vm121_vm2  ;;  %vm737_vm2 = vcmp.lt.s32.totalorder %v1666_v63, %v1679_v25 }
 0x766   :  { %vm1248_vm11 = vmpackc.low %vm129_vm10, %vm128_vm7 }
 0x767   :  { %1249 = vmatmul.mubr.msk.bf16.gmra.mrb[12].mxu0 %vm1248_vm11, %v1508_v34 }
 0x768   :  { %687 = vmatprep.mubr.bf16.mxu0 %v1507_v1 }
 0x7b3   :  { %v648_v8 = vpop.permute.xlu1 %647 }
 0x7b4   :  { %v650_v11 = vsel %vm644_vm13, %v648_v8, %v1729_v12 }
 0x7b5   :  { %713 = vrot.lane.b32.xlu1 %v650_v11, %s1509_s3 }
 0x7be   :  { %v637_v15 = vpop.permute.xlu0 %636 }
 0x7bf   :  { %v639_v17 = vmul.f32 %v1755_v39, %v637_v15 }
 0x7c1   :  { %v645_v21 = vsel %vm644_vm13, %v639_v17, %v1734_v20 }
 0x7c2   :  { %v651_v29 = vpack.c.bf16 %v645_v21, %v645_v21 }
 0x7c4   :  { %1269 = vmatmul.mubr.msk.bf16.vlgmr.msra.gmra.mrb[16].mxu0 %vm373_vm12, %v651_v29 }
 0x7c5   :  { %842 = vmatpush1.bf16.msra.mxu0 %v1579_v10  ;;  %873 = vmatprep.mubr.bf16.mxu0 %v1507_v1 }
 0x7c6   :  { %843 = vmatprep.subr.bf16.mxu0 %v1586_v13 }
 0x7c9   :  { %844 = vmatpush1.bf16.msra.mxu0 %v1591_v14 }
 0x7ca   :  { %845 = vmatprep.subr.bf16.mxu0 %v1598_v16 }
 0x7cd   :  { %846 = vmatpush1.bf16.msra.mxu0 %v1604_v18 }
 0x7ce   :  { %847 = vmatprep.subr.bf16.mxu0 %v1610_v19 }
 0x7d1   :  { %848 = vmatpush1.bf16.msra.mxu0 %v1615_v22 }
 0x7d2   :  { %1027 = vmatprep.subr.bf16.mxu0 %v1574_v9 }
 0x827   :  { %v714_v48 = vpop.permute.xlu1 %713 }
 0x82c   :  { %v300_v34 = vpop.f32.mrb[8].mxu0 }
 0x82d   :  { %v302_v61 = vpop.f32.mrb[9].mxu0 }
 0x82e   :  { %v1812_v12 = vpop.f32.mrb[10].mxu0 }
 0x82f   :  { %v1814_v20 = vpop.f32.mrb[11].mxu0 }
 0x83a   :  { %v1816_v60 = vpop.f32.mrb[12].mxu0 }
 0x83b   :  { %v1818_v23 = vpop.f32.mrb[13].mxu0 }
 0x83c   :  { %v1820_v27 = vpop.f32.mrb[14].mxu0 }
 0x83d   :  { %v1822_v28 = vpop.f32.mrb[15].mxu0 }
 0x897   :  { %v689_v30 = vpop.f32.mrb[16].mxu0 }
 0x898   :  { %v696_v31 = vadd.f32 %v689_v30, %v1748_v24  ;;  %v691_v32 = vpop.f32.mrb[17].mxu0 }
 0x899   :  { %v697_v9 = vadd.f32 %v691_v32, %v1750_v26  ;;  %v693_v33 = vpop.f32.mrb[18].mxu0 }
 0x89a   :  { %v694_v35 = vpop.f32.mrb[19].mxu0  ;;  %v1270_v42 = vmul.f32 -1.442695, %v696_v31 }
 0x89b   :  { %v1271_v36 = vmul.f32 -1.442695, %v697_v9 }
 0x89d   :  { %1405 = vpow2.f32 %v1271_v36 }
 0x8a7   :  { %v1406_v37 = vpop.eup %1405 }
 0x8a8   :  { %v705_v38 = vadd.f32 1.0, %v1406_v37 }
 0x8aa   :  { %1407 = vrcp.f32 %v705_v38 }
 0x8ab   :  { %1409 = vpow2.f32 %v1270_v42 }
 0x8b4   :  { %v1408_v39 = vpop.eup %1407 }
 0x8b5   :  { %v710_v40 = vmul.f32 2.0, %v1408_v39  ;;  %v1410_v45 = vpop.eup %1409 }
 0x8b6   :  { %v704_v46 = vadd.f32 1.0, %v1410_v45 }
 0x8b7   :  { %v1272_v41 = vadd.f32 -1.0, %v710_v40 }
 0x8b8   :  { %1411 = vrcp.f32 %v704_v46 }
 0x8b9   :  { %718 = vrot.lane.b32.xlu0 %v1272_v41, %s1509_s3 }
 0x8c2   :  { %v1412_v24 = vpop.eup %1411 }
 0x8c3   :  { %v716_v49 = vmul.f32 %v1412_v24, %v714_v48 }
 0x92b   :  { %v719_v47 = vpop.permute.xlu0 %718 }
 0x92c   :  { %v721_v26 = vmul.f32 %v1412_v24, %v719_v47 }
 0x92e   :  { %723 = vrot.lane.b32.xlu0 %v721_v26, %s1509_s3 }
 0x9a0   :  { %v724_v50 = vpop.permute.xlu0 %723 }
 0x9a1   :  { %v726_v51 = vadd.f32 %v724_v50, %v716_v49 }
 0x9a3   :  { %1413 = vtanh.f32 %v726_v51  ;;  %740 = vrot.lane.b32.xlu0 %v726_v51, %s1509_s3 }
 0x9ad   :  { %v1414_v52 = vpop.eup %1413 }
 0x9ae   :  { %729 = vrot.lane.b32.xlu1 %v1414_v52, %s1509_s3 }
 0xa15   :  { %v741_v43 = vpop.permute.xlu0 %740 }
 0xa16   :  { %v743_v53 = vsel %vm737_vm2, %v741_v43, %v650_v11 }
 0xa17   :  { %806 = vrot.lane.b32.xlu0 %v743_v53, %s1509_s3 }
 0xa20   :  { %v730_v44 = vpop.permute.xlu1 %729 }
 0xa21   :  { %v732_v54 = vmul.f32 %v1408_v39, %v730_v44 }
 0xa23   :  { %v738_v55 = vsel %vm737_vm2, %v732_v54, %v645_v21 }
 0xa24   :  { %v744_v56 = vpack.c.bf16 %v738_v55, %v738_v55 }
 0xa26   :  { %1273 = vmatmul.mubr.msk.bf16.vlgmr.msra.gmra.mrb[12].mxu1 %vm373_vm12, %v744_v56 }
 0xa27   :  { %935 = vmatpush1.bf16.msra.mxu1 %v1579_v10  ;;  %966 = vmatprep.mubr.bf16.mxu1 %v1507_v1 }
 0xa28   :  { %936 = vmatprep.subr.bf16.mxu1 %v1586_v13 }
 0xa2b   :  { %937 = vmatpush1.bf16.msra.mxu1 %v1591_v14 }
 0xa2c   :  { %938 = vmatprep.subr.bf16.mxu1 %v1598_v16 }
 0xa2f   :  { %939 = vmatpush1.bf16.msra.mxu1 %v1604_v18 }
 0xa30   :  { %940 = vmatprep.subr.bf16.mxu1 %v1610_v19 }
 0xa33   :  { %941 = vmatpush1.bf16.msra.mxu1 %v1615_v22 }
 0xa89   :  { %v807_v32 = vpop.permute.xlu0 %806 }
 0xaf9   :  { %v782_v63 = vpop.f32.mrb[12].mxu1 }
 0xafa   :  { %v789_v57 = vadd.f32 %v782_v63, %v300_v34  ;;  %v784_v58 = vpop.f32.mrb[13].mxu1 }
 0xafb   :  { %v790_v0 = vadd.f32 %v784_v58, %v302_v61  ;;  %v786_v59 = vpop.f32.mrb[14].mxu1 }
 0xafc   :  { %v787_v62 = vpop.f32.mrb[15].mxu1  ;;  %v1274_v21 = vmul.f32 -1.442695, %v789_v57 }
 0xafd   :  { %v1275_v6 = vmul.f32 -1.442695, %v790_v0 }
 0xaff   :  { %1415 = vpow2.f32 %v1275_v6 }
 0xb09   :  { %v1416_v7 = vpop.eup %1415 }
 0xb0a   :  { %v798_v8 = vadd.f32 1.0, %v1416_v7 }
 0xb0c   :  { %1417 = vrcp.f32 %v798_v8 }
 0xb0d   :  { %1419 = vpow2.f32 %v1274_v21 }
 0xb16   :  { %v1418_v11 = vpop.eup %1417 }
 0xb17   :  { %v803_v15 = vmul.f32 2.0, %v1418_v11  ;;  %v1420_v29 = vpop.eup %1419 }
 0xb18   :  { %v797_v30 = vadd.f32 1.0, %v1420_v29 }
 0xb19   :  { %v1276_v17 = vadd.f32 -1.0, %v803_v15 }
 0xb1a   :  { %1421 = vrcp.f32 %v797_v30 }
 0xb1b   :  { %811 = vrot.lane.b32.xlu1 %v1276_v17, %s1509_s3 }
 0xb24   :  { %v1422_v34 = vpop.eup %1421 }
 0xb25   :  { %v809_v9 = vmul.f32 %v1422_v34, %v807_v32 }
 0xb8d   :  { %v812_v31 = vpop.permute.xlu1 %811 }
 0xb8e   :  { %v814_v61 = vmul.f32 %v1422_v34, %v812_v31 }
 0xb90   :  { %816 = vrot.lane.b32.xlu1 %v814_v61, %s1509_s3 }
 0xc02   :  { %v817_v33 = vpop.permute.xlu1 %816 }
 0xc03   :  { %v819_v35 = vadd.f32 %v817_v33, %v809_v9 }
 0xc05   :  { %1423 = vtanh.f32 %v819_v35  ;;  %833 = vrot.lane.b32.xlu1 %v819_v35, %s1509_s3 }
 0xc0f   :  { %v1424_v36 = vpop.eup %1423 }
 0xc10   :  { %822 = vrot.lane.b32.xlu0 %v1424_v36, %s1509_s3 }
 0xc77   :  { %v834_v37 = vpop.permute.xlu1 %833 }
 0xc78   :  { %v836_v38 = vsel %vm830_vm14, %v834_v37, %v743_v53 }
 0xc79   :  { %899 = vrot.lane.b32.xlu1 %v836_v38, %s1509_s3 }
 0xc82   :  { %v823_v39 = vpop.permute.xlu0 %822 }
 0xc83   :  { %v825_v40 = vmul.f32 %v1418_v11, %v823_v39 }
 0xc85   :  { %v831_v41 = vsel %vm830_vm14, %v825_v40, %v738_v55 }
 0xc86   :  { %v837_v42 = vpack.c.bf16 %v831_v41, %v831_v41 }
 0xc88   :  { %1277 = vmatmul.mubr.msk.bf16.vlgmr.msra.gmra.mrb[20].mxu0 %vm373_vm12, %v837_v42 }
 0xc89   :  { %1028 = vmatpush1.bf16.msra.mxu0 %v1579_v10  ;;  %1059 = vmatprep.mubr.bf16.mxu0 %v1507_v1 }
 0xc8a   :  { %1029 = vmatprep.subr.bf16.mxu0 %v1586_v13 }
 0xc8d   :  { %1030 = vmatpush1.bf16.msra.mxu0 %v1591_v14 }
 0xc8e   :  { %1031 = vmatprep.subr.bf16.mxu0 %v1598_v16 }
 0xc91   :  { %1032 = vmatpush1.bf16.msra.mxu0 %v1604_v18 }
 0xc92   :  { %1033 = vmatprep.subr.bf16.mxu0 %v1610_v19 }
 0xc95   :  { %1034 = vmatpush1.bf16.msra.mxu0 %v1615_v22 }
 0xceb   :  { %v900_v50 = vpop.permute.xlu1 %899 }
 0xd5b   :  { %v875_v2 = vpop.f32.mrb[20].mxu0 }
 0xd5c   :  { %v882_v45 = vadd.f32 %v875_v2, %v1812_v12  ;;  %v877_v46 = vpop.f32.mrb[21].mxu0 }
 0xd5d   :  { %v883_v10 = vadd.f32 %v877_v46, %v1814_v20  ;;  %v879_v24 = vpop.f32.mrb[22].mxu0 }
 0xd5e   :  { %v880_v1 = vpop.f32.mrb[23].mxu0  ;;  %v1278_v19 = vmul.f32 -1.442695, %v882_v45 }
 0xd5f   :  { %v1279_v47 = vmul.f32 -1.442695, %v883_v10 }
 0xd61   :  { %1425 = vpow2.f32 %v1279_v47 }
 0xd6b   :  { %v1426_v13 = vpop.eup %1425 }
 0xd6c   :  { %v891_v14 = vadd.f32 1.0, %v1426_v13 }
 0xd6e   :  { %1427 = vrcp.f32 %v891_v14 }
 0xd6f   :  { %1429 = vpow2.f32 %v1278_v19 }
 0xd78   :  { %v1428_v16 = vpop.eup %1427 }
 0xd79   :  { %v896_v26 = vmul.f32 2.0, %v1428_v16  ;;  %v1430_v22 = vpop.eup %1429 }
 0xd7a   :  { %v890_v48 = vadd.f32 1.0, %v1430_v22 }
 0xd7b   :  { %v1280_v18 = vadd.f32 -1.0, %v896_v26 }
 0xd7c   :  { %1431 = vrcp.f32 %v890_v48  ;;  %v1371_v48 = vld [vmem:[%s1917_s4] sm:$0xff]  }
 0xd7d   :  { %904 = vrot.lane.b32.xlu0 %v1280_v18, %s1509_s3 }
 0xd86   :  { %v1432_v12 = vpop.eup %1431 }
 0xd87   :  { %v902_v51 = vmul.f32 %v1432_v12, %v900_v50 }
 0xdef   :  { %v905_v49 = vpop.permute.xlu0 %904 }
 0xdf0   :  { %v907_v20 = vmul.f32 %v1432_v12, %v905_v49  ;;  %v1510_v12 = vmov 0.0   ;;  %v1372_v49 = vld [vmem:[%s1917_s4 + $0x8] sm:$0xff]  }
 0xdf1   :  { %1300 = vmatprep.subr.bf16.mxu1 %v1510_v12 }
 0xdf2   :  { %909 = vrot.lane.b32.xlu0 %v907_v20, %s1509_s3  ;;  %v1373_v20 = vld [vmem:[%s1917_s4 + $0x10] sm:$0xff]  }
 0xe64   :  { %v910_v52 = vpop.permute.xlu0 %909 }
 0xe65   :  { %v912_v43 = vadd.f32 %v910_v52, %v902_v51 }
 0xe67   :  { %1433 = vtanh.f32 %v912_v43  ;;  %926 = vrot.lane.b32.xlu0 %v912_v43, %s1509_s3 }
 0xe71   :  { %v1434_v53 = vpop.eup %1433 }
 0xe72   :  { %915 = vrot.lane.b32.xlu1 %v1434_v53, %s1509_s3  ;;  %v1374_v53 = vld [vmem:[%s1917_s4 + $0x18] sm:$0xff]   ;;  %s1512_s4 = smov 123  }
 0xed9   :  { %v927_v44 = vpop.permute.xlu0 %926 }
 0xeda   :  { %v929_v54 = vsel %vm923_vm15, %v927_v44, %v836_v38 }
 0xedb   :  { %992 = vrot.lane.b32.xlu0 %v929_v54, %s1509_s3 }
 0xee4   :  { %v916_v55 = vpop.permute.xlu1 %915 }
 0xee5   :  { %v918_v56 = vmul.f32 %v1428_v16, %v916_v55 }
 0xee7   :  { %v924_v63 = vsel %vm923_vm15, %v918_v56, %v831_v41 }
 0xee8   :  { %v930_v57 = vpack.c.bf16 %v924_v63, %v924_v63 }
 0xeea   :  { %1281 = vmatmul.mubr.msk.bf16.vlgmr.msra.gmra.mrb[16].mxu1 %vm373_vm12, %v930_v57 }
 0xeeb   :  { %1301 = vmatpush3.bf16.msra.mxu1 %v1371_v48  ;;  %1308 = vmatprep.mubr.msk.bf16.mxu1 %vm1511_vm1, %v1510_v12 }
 0xeec   :  { %1302 = vmatprep.subr.bf16.mxu1 %v1510_v12 }
 0xeef   :  { %1303 = vmatpush3.bf16.msra.mxu1 %v1372_v49 }
 0xef0   :  { %1304 = vmatprep.subr.bf16.mxu1 %v1510_v12 }
 0xef3   :  { %1305 = vmatpush3.bf16.msra.mxu1 %v1373_v20 }
 0xef4   :  { %1306 = vmatprep.subr.bf16.mxu1 %v1510_v12 }
 0xef7   :  { %1307 = vmatpush3.bf16.msra.mxu1 %v1374_v53 }
 0xf4d   :  { %v993_v61 = vpop.permute.xlu0 %992 }
 0xfbd   :  { %v968_v58 = vpop.f32.mrb[16].mxu1 }
 0xfbe   :  { %v975_v0 = vadd.f32 %v968_v58, %v1816_v60  ;;  %v970_v59 = vpop.f32.mrb[17].mxu1 }
 0xfbf   :  { %v976_v62 = vadd.f32 %v970_v59, %v1818_v23  ;;  %v972_v6 = vpop.f32.mrb[18].mxu1 }
 0xfc0   :  { %v973_v7 = vpop.f32.mrb[19].mxu1  ;;  %v1282_v29 = vmul.f32 -1.442695, %v975_v0  ;;  %v1294_v6 = vld [vmem:[%s1918_s5] ss:$0 sm:$0xff] }
 0xfc1   :  { %v1283_v8 = vmul.f32 -1.442695, %v976_v62 }
 0xfc3   :  { %1435 = vpow2.f32 %v1283_v8 }
 0xfcd   :  { %v1436_v3 = vpop.eup %1435 }
 0xfce   :  { %v984_v11 = vadd.f32 1.0, %v1436_v3 }
 0xfd0   :  { %1437 = vrcp.f32 %v984_v11 }
 0xfd1   :  { %1439 = vpow2.f32 %v1282_v29 }
 0xfda   :  { %v1438_v15 = vpop.eup %1437 }
 0xfdb   :  { %v989_v17 = vmul.f32 2.0, %v1438_v15  ;;  %v1440_v30 = vpop.eup %1439 }
 0xfdc   :  { %v983_v34 = vadd.f32 1.0, %v1440_v30 }
 0xfdd   :  { %v1284_v21 = vadd.f32 -1.0, %v989_v17 }
 0xfde   :  { %1441 = vrcp.f32 %v983_v34 }
 0xfdf   :  { %997 = vrot.lane.b32.xlu1 %v1284_v21, %s1509_s3 }
 0xfe8   :  { %v1442_v60 = vpop.eup %1441 }
 0xfe9   :  { %v995_v32 = vmul.f32 %v1442_v60, %v993_v61 }
0x1051   :  { %v998_v31 = vpop.permute.xlu1 %997 }
0x1052   :  { %v1000_v23 = vmul.f32 %v1442_v60, %v998_v31 }
0x1054   :  { %1002 = vrot.lane.b32.xlu1 %v1000_v23, %s1509_s3 }
0x10c6   :  { %v1003_v9 = vpop.permute.xlu1 %1002 }
0x10c7   :  { %v1005_v33 = vadd.f32 %v1003_v9, %v995_v32 }
0x10c9   :  { %1443 = vtanh.f32 %v1005_v33  ;;  %1019 = vrot.lane.b32.xlu1 %v1005_v33, %s1509_s3 }
0x10d3   :  { %v1444_v35 = vpop.eup %1443 }
0x10d4   :  { %1008 = vrot.lane.b32.xlu0 %v1444_v35, %s1509_s3 }
0x113b   :  { %v1020_v36 = vpop.permute.xlu1 %1019 }
0x113c   :  { %v1022_v37 = vsel %vm1016_vm0, %v1020_v36, %v929_v54 }
0x113d   :  { %1085 = vrot.lane.b32.xlu1 %v1022_v37, %s1509_s3 }
0x1146   :  { %v1009_v38 = vpop.permute.xlu0 %1008 }
0x1147   :  { %v1011_v39 = vmul.f32 %v1438_v15, %v1009_v38 }
0x1149   :  { %v1017_v40 = vsel %vm1016_vm0, %v1011_v39, %v924_v63 }
0x114a   :  { %v1023_v41 = vpack.c.bf16 %v1017_v40, %v1017_v40 }
0x114c   :  { %1285 = vmatmul.mubr.msk.bf16.vlgmr.msra.gmra.mrb[24].mxu0 %vm373_vm12, %v1023_v41 }
0x11af   :  { %v1086_v50 = vpop.permute.xlu1 %1085 }
0x121f   :  { %v1061_v42 = vpop.f32.mrb[24].mxu0 }
0x1220   :  { %v1068_v2 = vadd.f32 %v1061_v42, %v1820_v27  ;;  %v1063_v45 = vpop.f32.mrb[25].mxu0 }
0x1221   :  { %v1069_v46 = vadd.f32 %v1063_v45, %v1822_v28  ;;  %v1065_v10 = vpop.f32.mrb[26].mxu0 }
0x1222   :  { %v1066_v24 = vpop.f32.mrb[27].mxu0  ;;  %v1286_v26 = vmul.f32 -1.442695, %v1068_v2 }
0x1223   :  { %v1287_v1 = vmul.f32 -1.442695, %v1069_v46 }
0x1225   :  { %1445 = vpow2.f32 %v1287_v1 }
0x122f   :  { %v1446_v5 = vpop.eup %1445 }
0x1230   :  { %v1077_v47 = vadd.f32 1.0, %v1446_v5 }
0x1232   :  { %1447 = vrcp.f32 %v1077_v47 }
0x1233   :  { %1449 = vpow2.f32 %v1286_v26 }
0x123c   :  { %v1448_v13 = vpop.eup %1447 }
0x123d   :  { %v1082_v14 = vmul.f32 2.0, %v1448_v13  ;;  %v1450_v18 = vpop.eup %1449 }
0x123e   :  { %v1076_v19 = vadd.f32 1.0, %v1450_v18 }
0x123f   :  { %v1288_v16 = vadd.f32 -1.0, %v1082_v14 }
0x1240   :  { %1451 = vrcp.f32 %v1076_v19 }
0x1241   :  { %1090 = vrot.lane.b32.xlu0 %v1288_v16, %s1509_s3 }
0x124a   :  { %v1452_v27 = vpop.eup %1451 }
0x124b   :  { %v1088_v51 = vmul.f32 %v1452_v27, %v1086_v50 }
0x12b3   :  { %v1091_v22 = vpop.permute.xlu0 %1090 }
0x12b4   :  { %v1093_v28 = vmul.f32 %v1452_v27, %v1091_v22 }
0x12b6   :  { %1095 = vrot.lane.b32.xlu0 %v1093_v28, %s1509_s3 }
0x1328   :  { %v1096_v52 = vpop.permute.xlu0 %1095 }
0x1329   :  { %v1098_v43 = vadd.f32 %v1096_v52, %v1088_v51 }
0x132b   :  { %1453 = vtanh.f32 %v1098_v43 }
0x1335   :  { %v1454_v44 = vpop.eup %1453 }
0x1336   :  { %1101 = vrot.lane.b32.xlu1 %v1454_v44, %s1509_s3 }
0x13a8   :  { %v1102_v54 = vpop.permute.xlu1 %1101 }
0x13a9   :  { %v1104_v55 = vmul.f32 %v1448_v13, %v1102_v54 }
0x13ab   :  { %v1110_v56 = vsel %vm1109_vm3, %v1104_v55, %v1017_v40 }
0x13ac   :  { %v1111_v63 = vpack.c.bf16 %v1110_v56, %v1110_v56 }
0x13ae   :  { %1309 = vmatmul.mubr.msk.bf16.vlgmr.msra.gmra.mrb[20].mxu1 %vm373_vm12, %v1111_v63 }
0x1481   :  { %v1181_v57 = vpop.f32.mrb[20].mxu1 }
0x1482   :  { %v1188_v58 = vrot.slane %v1181_v57, 2  ;;  %v1310_v0 = vpop.f32.mrb[21].mxu1 }
0x1483   :  { %v1184_v59 = vpop.f32.mrb[22].mxu1 }
0x1484   :  { %1189 = vrot.lane.b32.xlu0 %v1188_v58, %s1512_s4  ;;  %v1311_v62 = vpop.f32.mrb[23].mxu1 }
0x14f6   :  { %v1190_v7 = vpop.permute.xlu0 %1189 }
0x14f7   :  { %v1192_v8 = vadd.f32 %v1190_v7, %v1181_v57 }
0x14f9   :  { %v1200_v4 = vadd.f32 %v1294_v6, %v1192_v8 }
0x14fb   :  { %1202 = vst.msk [vmem:[#allocation5] sm:$0x3] %vm1201_vm4, %v1200_v4 }
0x14fc   :  { %1488 = shalt.err (!%p1485_p12)
}
0x14fd   :  { %s1489_s7 = scalar_lea.hbm %s1919_s6, 32 }
0x14fe   :  { %p1490_p13 = scmp.ne.s32.totalorder %s1919_s6, %s1489_s7  ;;  %p1493_p0 = scmp.lt.u32.totalorder %s1489_s7, %s1919_s6 }
0x1500   :  { %p1495_p1 = pnand %p1493_p0, %p1490_p13 }
0x1502   :  { %1498 = shalt.err (!%p1495_p1)
}
0x1503   :  { %1212 = dma.vmem_to_hbm [thread:$0]  %s1210_s28, 32, %s1919_s6, [#allocation4]  }
0x1504   :  { %1501 = dma.done.wait [#allocation4], 32  }
0x1505   :  { %1502 = vsyncadd [#allocation4], 4294967264 }
0x1506   :  { %1216 = vsyncpa [#allocation3], 1 }
0x1507   :  { %1217 = vsyncpa [#allocation4], 1 }

</bundles_post_ra>
